<compile_context>
chip_gen: v5e
topology: v5e:2x2
jax: 0.10.0
libtpu: 0.0.40
codegen_flags: <defaults>
</compile_context>

<pallas_src>
import functools
import math

import jax
import jax.numpy as jnp
import numpy as np
from jax import lax
from jax.experimental import pallas as pl
from jax.experimental.pallas import tpu as pltpu

S = 4                              # number of scales
REDUCTION = 4
CHANNEL = 64                       # module hard-codes 64 in its conv definitions
CPS = CHANNEL // S                 # channels per scale = 16
HID = CHANNEL // (S * REDUCTION)   # SE hidden channels = 4
KMAX = 2 * S + 1                   # largest conv kernel = 9 (all branches padded to it)
PAD = KMAX // 2                    # = 4

CONV_DTYPE = jnp.bfloat16          # MXU-native dtype for conv / SE matmuls
LANE_CAP = 4096                    # target lanes per grid step (sweepable)
BT_CAP = 64                        # bound on batch elements packed per step


# --------------------------------------------------------------------------- roll
_ROLL_MODE_CACHE = "unset"


def _get_roll_mode():
    """Probe pltpu.roll once: 'np' (matches np.roll), 'rev', or None (unavailable)."""
    global _ROLL_MODE_CACHE
    if _ROLL_MODE_CACHE != "unset":
        return _ROLL_MODE_CACHE
    try:
        def probe(x_ref, o_ref):
            o_ref[...] = pltpu.roll(x_ref[...], shift=1, axis=-1)

        x = jnp.broadcast_to(jnp.arange(128, dtype=jnp.float32), (8, 128))
        y = np.asarray(
            pl.pallas_call(
                probe, out_shape=jax.ShapeDtypeStruct((8, 128), jnp.float32))(x))
        if y[0, 0] == 127.0 and y[0, 1] == 0.0:
            _ROLL_MODE_CACHE = "np"      # roll(x, s)[t] == x[(t - s) % n]
        elif y[0, 0] == 1.0:
            _ROLL_MODE_CACHE = "rev"     # roll(x, s)[t] == x[(t + s) % n]
        else:
            _ROLL_MODE_CACHE = None
    except Exception:
        _ROLL_MODE_CACHE = None          # fall back to pad + static slice
    return _ROLL_MODE_CACHE


# --------------------------------------------------------------------------- tiling
def _pick_batch_tile(b, h):
    """How many batch elements share one grid step (lane width = bt*h)."""
    if h % 128 == 0:
        bt_align = 1
    else:
        bt_align = 128 // math.gcd(h, 128)     # smallest bt with (bt*h) % 128 == 0
        if b <= bt_align:
            return b                           # one grid step; block == full array
    bt = bt_align
    while bt * 2 <= b and bt * 2 * h <= LANE_CAP and bt * 2 <= BT_CAP:
        bt *= 2
    # v7x megacore: keep at least 2 grid steps whenever the batch allows it.
    while bt > bt_align and bt >= b:
        bt //= 2
    return max(bt, 1)


# --------------------------------------------------------------------------- params
def _build_fused_weights(conv_w, conv_b, se_w1, se_w2):
    # Per-tap block-diagonal conv weights: wtap[k, s*CPS+o, s*CPS+i] = conv_w[s,o,i,k]
    wtap = jnp.zeros((KMAX, CHANNEL, CHANNEL), jnp.float32)
    for s in range(S):
        wtap = wtap.at[:, s * CPS:(s + 1) * CPS, s * CPS:(s + 1) * CPS].set(
            jnp.transpose(conv_w[s], (2, 0, 1)))
    bias_col = conv_b.reshape(CHANNEL, 1).astype(jnp.float32)

    # Block-diagonal SE weights (all scales handled by one small matmul each).
    w1 = jnp.zeros((S * HID, CHANNEL), jnp.float32)
    w2 = jnp.zeros((CHANNEL, S * HID), jnp.float32)
    for s in range(S):
        w1 = w1.at[s * HID:(s + 1) * HID, s * CPS:(s + 1) * CPS].set(se_w1[s])
        w2 = w2.at[s * CPS:(s + 1) * CPS, s * HID:(s + 1) * HID].set(se_w2[s])
    return wtap.astype(CONV_DTYPE), bias_col, w1, w2


def _build_constants(h, bt):
    n = bt * h
    t = np.arange(n) % h
    masks = np.stack(
        [((t + k - PAD >= 0) & (t + k - PAD < h)).astype(np.float32)
         for k in range(KMAX)], axis=0)[:, None, :]            # (KMAX, 1, n)
    pool = np.zeros((n, bt), np.float32)                       # 0/1 (exact in bf16)
    for j in range(bt):
        pool[j * h:(j + 1) * h, j] = 1.0
    expand = pool.T.copy()                                     # (bt, n) 0/1
    return (jnp.asarray(masks, dtype=CONV_DTYPE),
            jnp.asarray(pool, dtype=CONV_DTYPE),
            jnp.asarray(expand, dtype=CONV_DTYPE))


# --------------------------------------------------------------------------- kernel
def _make_psa_kernel(h, bt, natural_io, roll_mode):
    """Kernel body specialised for sequence length h, batch tile bt and IO layout."""
    n = bt * h
    use_roll = roll_mode in ("np", "rev") and (n % 128 == 0)
    apply_mask = use_roll or bt > 1   # roll wraps at edges; bt>1 crosses batches

    def kernel(x_ref, wconv_ref, bias_ref, w1_ref, w2_ref,
               mask_ref, pool_ref, expand_ref, o_ref):
        # ---- load input as a lane-packed (C, n) bf16 working slab ----
        if natural_io:
            if bt == 1:
                xb = x_ref[0].astype(CONV_DTYPE)
            else:  # aligned (h % 128 == 0) in-kernel packing, VMEM-local
                xb = jnp.concatenate([x_ref[j] for j in range(bt)],
                                     axis=-1).astype(CONV_DTYPE)
        else:
            xb = x_ref[...]                                   # bf16 slab from wrapper

        # ---- multi-scale conv: 9 accumulating (64,64)@(64,n) bf16 MXU matmuls ----
        if not use_roll:
            xp = jnp.pad(xb, ((0, 0), (PAD, PAD)))            # fallback path
        acc = None
        for k in range(KMAX):
            if k == PAD:
                xk = xb                                       # centre tap: no shift
            else:
                if use_roll:
                    sh = (PAD - k) % n if roll_mode == "np" else (k - PAD) % n
                    xk = pltpu.roll(xb, shift=sh, axis=-1)    # XLU, off the vld/vst path
                else:
                    xk = xp[:, k:k + n]
                if apply_mask:
                    xk = xk * mask_ref[k]                     # zero wrapped / OOB taps
            part = jnp.dot(wconv_ref[k], xk, preferred_element_type=jnp.float32)
            acc = part if acc is None else acc + part
        y = acc + bias_ref[...]                               # (C, n) f32

        # ---- SE blocks, batched over all scales & packed batch (bf16 matmuls) ----
        if bt == 1:
            pooled = jnp.mean(y, axis=-1, keepdims=True)      # (C, 1) f32
        else:
            pooled = jnp.dot(y.astype(CONV_DTYPE), pool_ref[...],
                             preferred_element_type=jnp.float32) * (1.0 / h)  # (C, bt)
        hidden = jnp.maximum(
            jnp.dot(w1_ref[...], pooled, preferred_element_type=jnp.float32), 0.0)
        logits = jnp.dot(w2_ref[...], hidden, preferred_element_type=jnp.float32)
        se = jax.nn.sigmoid(logits)                           # (C, bt)

        # ---- softmax over the S scales (sublane-aligned channel groups) ----
        parts = [se[s * CPS:(s + 1) * CPS, :] for s in range(S)]
        m = parts[0]
        for p_ in parts[1:]:
            m = jnp.maximum(m, p_)
        exps = [jnp.exp(p_ - m) for p_ in parts]
        denom = exps[0]
        for e_ in exps[1:]:
            denom = denom + e_
        inv = pl.reciprocal(denom, approx=True)
        attn = jnp.concatenate([e_ * inv for e_ in exps], axis=0)   # (C, bt) f32

        # ---- broadcast per-batch attention over h and apply ----
        if bt == 1:
            out2d = y * attn                                   # (C,1) broadcast
        else:
            attn_full = jnp.dot(attn.astype(CONV_DTYPE), expand_ref[...],
                                preferred_element_type=jnp.float32)   # (C, n)
            out2d = y * attn_full

        # ---- store ----
        if natural_io:
            if bt == 1:
                o_ref[0] = out2d.astype(o_ref.dtype)
            else:
                for j in range(bt):                            # aligned lane slices
                    o_ref[j] = out2d[:, j * h:(j + 1) * h].astype(o_ref.dtype)
        else:
            o_ref[...] = out2d.astype(o_ref.dtype)

    return kernel


# --------------------------------------------------------------------------- wrapper
@functools.partial(jax.jit, static_argnames=("bt", "natural_io", "roll_mode"))
def _psa_call(x, conv_w, conv_b, se_w1, se_w2, *, bt, natural_io, roll_mode):
    b, c, h = x.shape
    n = bt * h
    b_pad = -(-b // bt) * bt

    wtap, bias_col, w1, w2 = _build_fused_weights(conv_w, conv_b, se_w1, se_w2)
    masks, pool, expand = _build_constants(h, bt)
    kernel = _make_psa_kernel(h, bt, natural_io, roll_mode)

    common_specs = [
        pl.BlockSpec((KMAX, CHANNEL, CHANNEL), lambda i: (0, 0, 0)),
        pl.BlockSpec((CHANNEL, 1), lambda i: (0, 0)),
        pl.BlockSpec((S * HID, CHANNEL), lambda i: (0, 0)),
        pl.BlockSpec((CHANNEL, S * HID), lambda i: (0, 0)),
        pl.BlockSpec((KMAX, 1, n), lambda i: (0, 0, 0)),
        pl.BlockSpec((n, bt), lambda i: (0, 0)),
        pl.BlockSpec((bt, n), lambda i: (0, 0)),
    ]
    cparams = pltpu.CompilerParams(
        dimension_semantics=("parallel",),
        vmem_limit_bytes=32 * 1024 * 1024)

    xs = x if b_pad == b else jnp.pad(x, ((0, b_pad - b), (0, 0), (0, 0)))

    if natural_io:
        # Natural (b, C, h) layout in and out: no wrapper transpose round trips.
        out = pl.pallas_call(
            kernel,
            out_shape=jax.ShapeDtypeStruct((b_pad, CHANNEL, h), x.dtype),
            grid_spec=pltpu.PrefetchScalarGridSpec(
                num_scalar_prefetch=0,
                grid=(b_pad // bt,),
                in_specs=[pl.BlockSpec((bt, CHANNEL, h), lambda i: (i, 0, 0))]
                         + common_specs,
                out_specs=pl.BlockSpec((bt, CHANNEL, h), lambda i: (i, 0, 0)),
            ),
            compiler_params=cparams,
        )(xs, wtap, bias_col, w1, w2, masks, pool, expand)
        return out[:b]

    # Lane-packed slab layout for non-128-aligned h (batch packed along lanes).
    x_slab = jnp.transpose(xs, (1, 0, 2)).reshape(
        CHANNEL, b_pad * h).astype(CONV_DTYPE)
    out_slab = pl.pallas_call(
        kernel,
        out_shape=jax.ShapeDtypeStruct((CHANNEL, b_pad * h), x.dtype),
        grid_spec=pltpu.PrefetchScalarGridSpec(
            num_scalar_prefetch=0,
            grid=(b_pad // bt,),
            in_specs=[pl.BlockSpec((CHANNEL, n), lambda i: (0, i))] + common_specs,
            out_specs=pl.BlockSpec((CHANNEL, n), lambda i: (0, i)),
        ),
        compiler_params=cparams,
    )(x_slab, wtap, bias_col, w1, w2, masks, pool, expand)
    out = jnp.transpose(out_slab.reshape(CHANNEL, b_pad, h), (1, 0, 2))
    return out[:b]


def psa_forward(x, conv_w, conv_b, se_w1, se_w2):
    b, c, h = x.shape
    assert c == CHANNEL
    natural_io = (h % 128 == 0)
    bt = _pick_batch_tile(b, h)
    roll_mode = _get_roll_mode() if (bt * h) % 128 == 0 else None
    return _psa_call(x, conv_w, conv_b, se_w1, se_w2,
                     bt=bt, natural_io=natural_io, roll_mode=roll_mode)


# --------------------------------------------------------------------------- reference
def psa_ref(x, conv_w, conv_b, se_w1, se_w2):
    """Pure-JAX f32 reference matching the PyTorch forward."""
    b, c, h = x.shape
    spc_in = x.reshape(b, S, CPS, h)
    conv_outs, se_outs = [], []
    for s in range(S):
        y = lax.conv_general_dilated(
            spc_in[:, s], conv_w[s], window_strides=(1,), padding=[(PAD, PAD)],
            dimension_numbers=('NCH', 'OIH', 'NCH'))
        y = y + conv_b[s][None, :, :]
        conv_outs.append(y)
        pooled = jnp.mean(y, axis=-1, keepdims=True)                    # (b, CPS, 1)
        hidden = jnp.maximum(jnp.einsum('oc,bcl->bol', se_w1[s], pooled), 0.0)
        se_outs.append(jax.nn.sigmoid(jnp.einsum('oc,bcl->bol', se_w2[s], hidden)))
    spc_out = jnp.stack(conv_outs, axis=1)                              # (b,S,CPS,h)
    se_out = jnp.broadcast_to(jnp.stack(se_outs, axis=1), spc_out.shape)
    attn = jax.nn.softmax(se_out, axis=1)
    return (spc_out * attn).reshape(b, c, h)


def make_params(key):
    k0, k1, k2, k3 = jax.random.split(key, 4)
    # Conv1d weights generated at the max kernel width, then masked so branch s keeps
    # only its centered window of size 2*(s+1)+1 (equivalent to the original
    # per-branch kernel sizes with "same" padding).
    conv_w = 0.1 * jax.random.normal(k0, (S, CPS, CPS, KMAX), jnp.float32)
    offs = jnp.abs(jnp.arange(KMAX) - PAD)                              # (KMAX,)
    mask = (offs[None, :] <= (jnp.arange(S)[:, None] + 1)).astype(jnp.float32)
    conv_w = conv_w * mask[:, None, None, :]
    conv_b = 0.1 * jax.random.normal(k1, (S, CPS, 1), jnp.float32)
    se_w1 = 0.1 * jax.random.normal(k2, (S, HID, CPS), jnp.float32)
    se_w2 = 0.1 * jax.random.normal(k3, (S, CPS, HID), jnp.float32)
    return conv_w, conv_b, se_w1, se_w2


if __name__ == "__main__":
    key = jax.random.PRNGKey(0)
    kx1, kx2, kp = jax.random.split(key, 3)
    conv_w, conv_b, se_w1, se_w2 = make_params(kp)

    # Config 1: tiny shapes, non-128-aligned h -> lane-packed slab + pad/slice path.
    x1 = jax.random.normal(kx1, (2, CHANNEL, 16), jnp.float32)
    out1 = jax.block_until_ready(psa_forward(x1, conv_w, conv_b, se_w1, se_w2))
    ref1 = psa_ref(x1, conv_w, conv_b, se_w1, se_w2)
    np.testing.assert_allclose(np.asarray(out1), np.asarray(ref1),
                               rtol=3e-2, atol=3e-2)

    # Config 2: 128-aligned h -> natural-layout IO, roll-based taps, 2 grid steps.
    x2 = jax.random.normal(kx2, (4, CHANNEL, 256), jnp.float32)
    out2 = jax.block_until_ready(psa_forward(x2, conv_w, conv_b, se_w1, se_w2))
    ref2 = psa_ref(x2, conv_w, conv_b, se_w1, se_w2)
    np.testing.assert_allclose(np.asarray(out2), np.asarray(ref2),
                               rtol=3e-2, atol=3e-2)

    print("KERNEL_OK")
</pallas_src>

<mosaic_0001>
module attributes {stable_mosaic.version = 11 : i64} {
  func.func @kernel(%arg0: i32, %arg1: memref<64x32xbf16, #tpu.memory_space<vmem>>, %arg2: memref<9x64x64xbf16, #tpu.memory_space<vmem>>, %arg3: memref<64x1xf32, #tpu.memory_space<vmem>>, %arg4: memref<16x64xf32, #tpu.memory_space<vmem>>, %arg5: memref<64x16xf32, #tpu.memory_space<vmem>>, %arg6: memref<9x1x32xbf16, #tpu.memory_space<vmem>>, %arg7: memref<32x2xbf16, #tpu.memory_space<vmem>>, %arg8: memref<2x32xbf16, #tpu.memory_space<vmem>>, %arg9: memref<64x32xf32, #tpu.memory_space<vmem>>) attributes {dimension_semantics = [#tpu.dimension_semantics<parallel>], iteration_bounds = array<i64: 1>, scalar_prefetch = 0 : i64, scratch_operands = 0 : i64, tpu.core_type = #tpu.core_type<tc>, window_params = [{transform_indices = @transform_0, window_bounds = array<i64: 64, 32>}, {pipeline_mode = #tpu.pipeline_mode<synchronous>, transform_indices = @transform_1, window_bounds = array<i64: 9, 64, 64>}, {pipeline_mode = #tpu.pipeline_mode<synchronous>, transform_indices = @transform_2, window_bounds = array<i64: 64, 1>}, {pipeline_mode = #tpu.pipeline_mode<synchronous>, transform_indices = @transform_3, window_bounds = array<i64: 16, 64>}, {pipeline_mode = #tpu.pipeline_mode<synchronous>, transform_indices = @transform_4, window_bounds = array<i64: 64, 16>}, {pipeline_mode = #tpu.pipeline_mode<synchronous>, transform_indices = @transform_5, window_bounds = array<i64: 9, 1, 32>}, {pipeline_mode = #tpu.pipeline_mode<synchronous>, transform_indices = @transform_6, window_bounds = array<i64: 32, 2>}, {pipeline_mode = #tpu.pipeline_mode<synchronous>, transform_indices = @transform_7, window_bounds = array<i64: 2, 32>}, {transform_indices = @transform_8, window_bounds = array<i64: 64, 32>}]} {
    %c0 = arith.constant 0 : index
    %c0_0 = arith.constant 0 : index
    %0 = vector.load %arg1[%c0, %c0_0] : memref<64x32xbf16, #tpu.memory_space<vmem>>, vector<64x32xbf16>
    %c0_i32 = arith.constant 0 : i32
    %1 = arith.sitofp %c0_i32 : i32 to bf16
    %2 = vector.broadcast %1 : bf16 to vector<64x4xbf16>
    %3 = tpu.concatenate %2, %0 in 1 : vector<64x4xbf16>, vector<64x32xbf16> -> vector<64x36xbf16>
    %4 = vector.broadcast %1 : bf16 to vector<64x4xbf16>
    %5 = tpu.concatenate %3, %4 in 1 : vector<64x36xbf16>, vector<64x4xbf16> -> vector<64x40xbf16>
    %6 = vector.extract_strided_slice %5 {offsets = [0, 0], sizes = [64, 32], strides = [1, 1]} : vector<64x40xbf16> to vector<64x32xbf16>
    %c0_1 = arith.constant 0 : index
    %c0_2 = arith.constant 0 : index
    %c0_3 = arith.constant 0 : index
    %7 = vector.load %arg6[%c0_1, %c0_2, %c0_3] : memref<9x1x32xbf16, #tpu.memory_space<vmem>>, vector<1x1x32xbf16>
    %8 = vector.shape_cast %7 : vector<1x1x32xbf16> to vector<1x32xbf16>
    %9 = vector.broadcast %8 : vector<1x32xbf16> to vector<64x32xbf16>
    %10 = arith.mulf %6, %9 : vector<64x32xbf16>
    %c0_4 = arith.constant 0 : index
    %c0_5 = arith.constant 0 : index
    %c0_6 = arith.constant 0 : index
    %11 = vector.load %arg2[%c0_4, %c0_5, %c0_6] : memref<9x64x64xbf16, #tpu.memory_space<vmem>>, vector<1x64x64xbf16>
    %12 = vector.shape_cast %11 : vector<1x64x64xbf16> to vector<64x64xbf16>
    %cst = arith.constant dense<0.000000e+00> : vector<64x32xf32>
    %13 = tpu.matmul %12, %10, %cst {dimension_numbers = #tpu.dot_dimension_numbers<[1], [0], [0], [1], [0, 0, 1, 1], [], []>} : vector<64x64xbf16>, vector<64x32xbf16>, vector<64x32xf32> -> vector<64x32xf32>
    %14 = vector.extract_strided_slice %5 {offsets = [0, 1], sizes = [64, 32], strides = [1, 1]} : vector<64x40xbf16> to vector<64x32xbf16>
    %c1 = arith.constant 1 : index
    %c0_7 = arith.constant 0 : index
    %c0_8 = arith.constant 0 : index
    %15 = vector.load %arg6[%c1, %c0_7, %c0_8] : memref<9x1x32xbf16, #tpu.memory_space<vmem>>, vector<1x1x32xbf16>
    %16 = vector.shape_cast %15 : vector<1x1x32xbf16> to vector<1x32xbf16>
    %17 = vector.broadcast %16 : vector<1x32xbf16> to vector<64x32xbf16>
    %18 = arith.mulf %14, %17 : vector<64x32xbf16>
    %c1_9 = arith.constant 1 : index
    %c0_10 = arith.constant 0 : index
    %c0_11 = arith.constant 0 : index
    %19 = vector.load %arg2[%c1_9, %c0_10, %c0_11] : memref<9x64x64xbf16, #tpu.memory_space<vmem>>, vector<1x64x64xbf16>
    %20 = vector.shape_cast %19 : vector<1x64x64xbf16> to vector<64x64xbf16>
    %cst_12 = arith.constant dense<0.000000e+00> : vector<64x32xf32>
    %21 = tpu.matmul %20, %18, %cst_12 {dimension_numbers = #tpu.dot_dimension_numbers<[1], [0], [0], [1], [0, 0, 1, 1], [], []>} : vector<64x64xbf16>, vector<64x32xbf16>, vector<64x32xf32> -> vector<64x32xf32>
    %22 = arith.addf %13, %21 : vector<64x32xf32>
    %23 = vector.extract_strided_slice %5 {offsets = [0, 2], sizes = [64, 32], strides = [1, 1]} : vector<64x40xbf16> to vector<64x32xbf16>
    %c2 = arith.constant 2 : index
    %c0_13 = arith.constant 0 : index
    %c0_14 = arith.constant 0 : index
    %24 = vector.load %arg6[%c2, %c0_13, %c0_14] : memref<9x1x32xbf16, #tpu.memory_space<vmem>>, vector<1x1x32xbf16>
    %25 = vector.shape_cast %24 : vector<1x1x32xbf16> to vector<1x32xbf16>
    %26 = vector.broadcast %25 : vector<1x32xbf16> to vector<64x32xbf16>
    %27 = arith.mulf %23, %26 : vector<64x32xbf16>
    %c2_15 = arith.constant 2 : index
    %c0_16 = arith.constant 0 : index
    %c0_17 = arith.constant 0 : index
    %28 = vector.load %arg2[%c2_15, %c0_16, %c0_17] : memref<9x64x64xbf16, #tpu.memory_space<vmem>>, vector<1x64x64xbf16>
    %29 = vector.shape_cast %28 : vector<1x64x64xbf16> to vector<64x64xbf16>
    %cst_18 = arith.constant dense<0.000000e+00> : vector<64x32xf32>
    %30 = tpu.matmul %29, %27, %cst_18 {dimension_numbers = #tpu.dot_dimension_numbers<[1], [0], [0], [1], [0, 0, 1, 1], [], []>} : vector<64x64xbf16>, vector<64x32xbf16>, vector<64x32xf32> -> vector<64x32xf32>
    %31 = arith.addf %22, %30 : vector<64x32xf32>
    %32 = vector.extract_strided_slice %5 {offsets = [0, 3], sizes = [64, 32], strides = [1, 1]} : vector<64x40xbf16> to vector<64x32xbf16>
    %c3 = arith.constant 3 : index
    %c0_19 = arith.constant 0 : index
    %c0_20 = arith.constant 0 : index
    %33 = vector.load %arg6[%c3, %c0_19, %c0_20] : memref<9x1x32xbf16, #tpu.memory_space<vmem>>, vector<1x1x32xbf16>
    %34 = vector.shape_cast %33 : vector<1x1x32xbf16> to vector<1x32xbf16>
    %35 = vector.broadcast %34 : vector<1x32xbf16> to vector<64x32xbf16>
    %36 = arith.mulf %32, %35 : vector<64x32xbf16>
    %c3_21 = arith.constant 3 : index
    %c0_22 = arith.constant 0 : index
    %c0_23 = arith.constant 0 : index
    %37 = vector.load %arg2[%c3_21, %c0_22, %c0_23] : memref<9x64x64xbf16, #tpu.memory_space<vmem>>, vector<1x64x64xbf16>
    %38 = vector.shape_cast %37 : vector<1x64x64xbf16> to vector<64x64xbf16>
    %cst_24 = arith.constant dense<0.000000e+00> : vector<64x32xf32>
    %39 = tpu.matmul %38, %36, %cst_24 {dimension_numbers = #tpu.dot_dimension_numbers<[1], [0], [0], [1], [0, 0, 1, 1], [], []>} : vector<64x64xbf16>, vector<64x32xbf16>, vector<64x32xf32> -> vector<64x32xf32>
    %40 = arith.addf %31, %39 : vector<64x32xf32>
    %c4 = arith.constant 4 : index
    %c0_25 = arith.constant 0 : index
    %c0_26 = arith.constant 0 : index
    %41 = vector.load %arg2[%c4, %c0_25, %c0_26] : memref<9x64x64xbf16, #tpu.memory_space<vmem>>, vector<1x64x64xbf16>
    %42 = vector.shape_cast %41 : vector<1x64x64xbf16> to vector<64x64xbf16>
    %cst_27 = arith.constant dense<0.000000e+00> : vector<64x32xf32>
    %43 = tpu.matmul %42, %0, %cst_27 {dimension_numbers = #tpu.dot_dimension_numbers<[1], [0], [0], [1], [0, 0, 1, 1], [], []>} : vector<64x64xbf16>, vector<64x32xbf16>, vector<64x32xf32> -> vector<64x32xf32>
    %44 = arith.addf %40, %43 : vector<64x32xf32>
    %45 = vector.extract_strided_slice %5 {offsets = [0, 5], sizes = [64, 32], strides = [1, 1]} : vector<64x40xbf16> to vector<64x32xbf16>
    %c5 = arith.constant 5 : index
    %c0_28 = arith.constant 0 : index
    %c0_29 = arith.constant 0 : index
    %46 = vector.load %arg6[%c5, %c0_28, %c0_29] : memref<9x1x32xbf16, #tpu.memory_space<vmem>>, vector<1x1x32xbf16>
    %47 = vector.shape_cast %46 : vector<1x1x32xbf16> to vector<1x32xbf16>
    %48 = vector.broadcast %47 : vector<1x32xbf16> to vector<64x32xbf16>
    %49 = arith.mulf %45, %48 : vector<64x32xbf16>
    %c5_30 = arith.constant 5 : index
    %c0_31 = arith.constant 0 : index
    %c0_32 = arith.constant 0 : index
    %50 = vector.load %arg2[%c5_30, %c0_31, %c0_32] : memref<9x64x64xbf16, #tpu.memory_space<vmem>>, vector<1x64x64xbf16>
    %51 = vector.shape_cast %50 : vector<1x64x64xbf16> to vector<64x64xbf16>
    %cst_33 = arith.constant dense<0.000000e+00> : vector<64x32xf32>
    %52 = tpu.matmul %51, %49, %cst_33 {dimension_numbers = #tpu.dot_dimension_numbers<[1], [0], [0], [1], [0, 0, 1, 1], [], []>} : vector<64x64xbf16>, vector<64x32xbf16>, vector<64x32xf32> -> vector<64x32xf32>
    %53 = arith.addf %44, %52 : vector<64x32xf32>
    %54 = vector.extract_strided_slice %5 {offsets = [0, 6], sizes = [64, 32], strides = [1, 1]} : vector<64x40xbf16> to vector<64x32xbf16>
    %c6 = arith.constant 6 : index
    %c0_34 = arith.constant 0 : index
    %c0_35 = arith.constant 0 : index
    %55 = vector.load %arg6[%c6, %c0_34, %c0_35] : memref<9x1x32xbf16, #tpu.memory_space<vmem>>, vector<1x1x32xbf16>
    %56 = vector.shape_cast %55 : vector<1x1x32xbf16> to vector<1x32xbf16>
    %57 = vector.broadcast %56 : vector<1x32xbf16> to vector<64x32xbf16>
    %58 = arith.mulf %54, %57 : vector<64x32xbf16>
    %c6_36 = arith.constant 6 : index
    %c0_37 = arith.constant 0 : index
    %c0_38 = arith.constant 0 : index
    %59 = vector.load %arg2[%c6_36, %c0_37, %c0_38] : memref<9x64x64xbf16, #tpu.memory_space<vmem>>, vector<1x64x64xbf16>
    %60 = vector.shape_cast %59 : vector<1x64x64xbf16> to vector<64x64xbf16>
    %cst_39 = arith.constant dense<0.000000e+00> : vector<64x32xf32>
    %61 = tpu.matmul %60, %58, %cst_39 {dimension_numbers = #tpu.dot_dimension_numbers<[1], [0], [0], [1], [0, 0, 1, 1], [], []>} : vector<64x64xbf16>, vector<64x32xbf16>, vector<64x32xf32> -> vector<64x32xf32>
    %62 = arith.addf %53, %61 : vector<64x32xf32>
    %63 = vector.extract_strided_slice %5 {offsets = [0, 7], sizes = [64, 32], strides = [1, 1]} : vector<64x40xbf16> to vector<64x32xbf16>
    %c7 = arith.constant 7 : index
    %c0_40 = arith.constant 0 : index
    %c0_41 = arith.constant 0 : index
    %64 = vector.load %arg6[%c7, %c0_40, %c0_41] : memref<9x1x32xbf16, #tpu.memory_space<vmem>>, vector<1x1x32xbf16>
    %65 = vector.shape_cast %64 : vector<1x1x32xbf16> to vector<1x32xbf16>
    %66 = vector.broadcast %65 : vector<1x32xbf16> to vector<64x32xbf16>
    %67 = arith.mulf %63, %66 : vector<64x32xbf16>
    %c7_42 = arith.constant 7 : index
    %c0_43 = arith.constant 0 : index
    %c0_44 = arith.constant 0 : index
    %68 = vector.load %arg2[%c7_42, %c0_43, %c0_44] : memref<9x64x64xbf16, #tpu.memory_space<vmem>>, vector<1x64x64xbf16>
    %69 = vector.shape_cast %68 : vector<1x64x64xbf16> to vector<64x64xbf16>
    %cst_45 = arith.constant dense<0.000000e+00> : vector<64x32xf32>
    %70 = tpu.matmul %69, %67, %cst_45 {dimension_numbers = #tpu.dot_dimension_numbers<[1], [0], [0], [1], [0, 0, 1, 1], [], []>} : vector<64x64xbf16>, vector<64x32xbf16>, vector<64x32xf32> -> vector<64x32xf32>
    %71 = arith.addf %62, %70 : vector<64x32xf32>
    %72 = vector.extract_strided_slice %5 {offsets = [0, 8], sizes = [64, 32], strides = [1, 1]} : vector<64x40xbf16> to vector<64x32xbf16>
    %c8 = arith.constant 8 : index
    %c0_46 = arith.constant 0 : index
    %c0_47 = arith.constant 0 : index
    %73 = vector.load %arg6[%c8, %c0_46, %c0_47] : memref<9x1x32xbf16, #tpu.memory_space<vmem>>, vector<1x1x32xbf16>
    %74 = vector.shape_cast %73 : vector<1x1x32xbf16> to vector<1x32xbf16>
    %75 = vector.broadcast %74 : vector<1x32xbf16> to vector<64x32xbf16>
    %76 = arith.mulf %72, %75 : vector<64x32xbf16>
    %c8_48 = arith.constant 8 : index
    %c0_49 = arith.constant 0 : index
    %c0_50 = arith.constant 0 : index
    %77 = vector.load %arg2[%c8_48, %c0_49, %c0_50] : memref<9x64x64xbf16, #tpu.memory_space<vmem>>, vector<1x64x64xbf16>
    %78 = vector.shape_cast %77 : vector<1x64x64xbf16> to vector<64x64xbf16>
    %cst_51 = arith.constant dense<0.000000e+00> : vector<64x32xf32>
    %79 = tpu.matmul %78, %76, %cst_51 {dimension_numbers = #tpu.dot_dimension_numbers<[1], [0], [0], [1], [0, 0, 1, 1], [], []>} : vector<64x64xbf16>, vector<64x32xbf16>, vector<64x32xf32> -> vector<64x32xf32>
    %80 = arith.addf %71, %79 : vector<64x32xf32>
    %c0_52 = arith.constant 0 : index
    %c0_53 = arith.constant 0 : index
    %81 = vector.load %arg3[%c0_52, %c0_53] : memref<64x1xf32, #tpu.memory_space<vmem>>, vector<64x1xf32>
    %82 = vector.broadcast %81 : vector<64x1xf32> to vector<64x32xf32>
    %83 = arith.addf %80, %82 : vector<64x32xf32>
    %84 = arith.truncf %83 : vector<64x32xf32> to vector<64x32xbf16>
    %c0_54 = arith.constant 0 : index
    %c0_55 = arith.constant 0 : index
    %85 = vector.load %arg7[%c0_54, %c0_55] : memref<32x2xbf16, #tpu.memory_space<vmem>>, vector<32x2xbf16>
    %cst_56 = arith.constant dense<0.000000e+00> : vector<64x2xf32>
    %86 = tpu.matmul %84, %85, %cst_56 {dimension_numbers = #tpu.dot_dimension_numbers<[1], [0], [0], [1], [0, 0, 1, 1], [], []>} : vector<64x32xbf16>, vector<32x2xbf16>, vector<64x2xf32> -> vector<64x2xf32>
    %cst_57 = arith.constant 6.250000e-02 : f32
    %87 = vector.broadcast %cst_57 : f32 to vector<64x2xf32>
    %88 = arith.mulf %86, %87 : vector<64x2xf32>
    %c0_58 = arith.constant 0 : index
    %c0_59 = arith.constant 0 : index
    %89 = vector.load %arg4[%c0_58, %c0_59] : memref<16x64xf32, #tpu.memory_space<vmem>>, vector<16x64xf32>
    %cst_60 = arith.constant dense<0.000000e+00> : vector<16x2xf32>
    %90 = tpu.matmul %89, %88, %cst_60 {dimension_numbers = #tpu.dot_dimension_numbers<[1], [0], [0], [1], [0, 0, 1, 1], [], []>} : vector<16x64xf32>, vector<64x2xf32>, vector<16x2xf32> -> vector<16x2xf32>
    %cst_61 = arith.constant 0.000000e+00 : f32
    %91 = vector.broadcast %cst_61 : f32 to vector<16x2xf32>
    %92 = arith.maximumf %90, %91 : vector<16x2xf32>
    %c0_62 = arith.constant 0 : index
    %c0_63 = arith.constant 0 : index
    %93 = vector.load %arg5[%c0_62, %c0_63] : memref<64x16xf32, #tpu.memory_space<vmem>>, vector<64x16xf32>
    %cst_64 = arith.constant dense<0.000000e+00> : vector<64x2xf32>
    %94 = tpu.matmul %93, %92, %cst_64 {dimension_numbers = #tpu.dot_dimension_numbers<[1], [0], [0], [1], [0, 0, 1, 1], [], []>} : vector<64x16xf32>, vector<16x2xf32>, vector<64x2xf32> -> vector<64x2xf32>
    %95 = arith.negf %94 : vector<64x2xf32>
    %96 = math.exp %95 : vector<64x2xf32>
    %cst_65 = arith.constant 1.000000e+00 : f32
    %97 = vector.broadcast %cst_65 : f32 to vector<64x2xf32>
    %98 = arith.addf %97, %96 : vector<64x2xf32>
    %99 = arith.divf %97, %98 : vector<64x2xf32>
    %100 = vector.extract_strided_slice %99 {offsets = [0, 0], sizes = [16, 2], strides = [1, 1]} : vector<64x2xf32> to vector<16x2xf32>
    %101 = vector.extract_strided_slice %99 {offsets = [16, 0], sizes = [16, 2], strides = [1, 1]} : vector<64x2xf32> to vector<16x2xf32>
    %102 = vector.extract_strided_slice %99 {offsets = [32, 0], sizes = [16, 2], strides = [1, 1]} : vector<64x2xf32> to vector<16x2xf32>
    %103 = vector.extract_strided_slice %99 {offsets = [48, 0], sizes = [16, 2], strides = [1, 1]} : vector<64x2xf32> to vector<16x2xf32>
    %104 = arith.maximumf %100, %101 : vector<16x2xf32>
    %105 = arith.maximumf %104, %102 : vector<16x2xf32>
    %106 = arith.maximumf %105, %103 : vector<16x2xf32>
    %107 = arith.subf %100, %106 : vector<16x2xf32>
    %108 = math.exp %107 : vector<16x2xf32>
    %109 = arith.subf %101, %106 : vector<16x2xf32>
    %110 = math.exp %109 : vector<16x2xf32>
    %111 = arith.subf %102, %106 : vector<16x2xf32>
    %112 = math.exp %111 : vector<16x2xf32>
    %113 = arith.subf %103, %106 : vector<16x2xf32>
    %114 = math.exp %113 : vector<16x2xf32>
    %115 = arith.addf %108, %110 : vector<16x2xf32>
    %116 = arith.addf %115, %112 : vector<16x2xf32>
    %117 = arith.addf %116, %114 : vector<16x2xf32>
    %118 = tpu.reciprocal %117 {approx = true} : vector<16x2xf32> -> vector<16x2xf32>
    %119 = arith.mulf %108, %118 : vector<16x2xf32>
    %120 = arith.mulf %110, %118 : vector<16x2xf32>
    %121 = arith.mulf %112, %118 : vector<16x2xf32>
    %122 = arith.mulf %114, %118 : vector<16x2xf32>
    %123 = tpu.concatenate %119, %120, %121, %122 in 0 : vector<16x2xf32>, vector<16x2xf32>, vector<16x2xf32>, vector<16x2xf32> -> vector<64x2xf32>
    %124 = arith.truncf %123 : vector<64x2xf32> to vector<64x2xbf16>
    %c0_66 = arith.constant 0 : index
    %c0_67 = arith.constant 0 : index
    %125 = vector.load %arg8[%c0_66, %c0_67] : memref<2x32xbf16, #tpu.memory_space<vmem>>, vector<2x32xbf16>
    %cst_68 = arith.constant dense<0.000000e+00> : vector<64x32xf32>
    %126 = tpu.matmul %124, %125, %cst_68 {dimension_numbers = #tpu.dot_dimension_numbers<[1], [0], [0], [1], [0, 0, 1, 1], [], []>} : vector<64x2xbf16>, vector<2x32xbf16>, vector<64x32xf32> -> vector<64x32xf32>
    %127 = arith.mulf %83, %126 : vector<64x32xf32>
    %c0_69 = arith.constant 0 : index
    %c0_70 = arith.constant 0 : index
    %128 = vector.load %arg9[%c0_69, %c0_70] : memref<64x32xf32, #tpu.memory_space<vmem>>, vector<64x32xf32>
    tpu.vector_store %arg9[%c0_69, %c0_70], %127 {strides = array<i32>} : memref<64x32xf32, #tpu.memory_space<vmem>>, vector<64x32xf32>,
    return
  }
  func.func @transform_0(%arg0: i32) -> (i32, i32) {
    %c0_i32 = arith.constant 0 : i32
    %c0_i32_0 = arith.constant 0 : i32
    return %c0_i32, %arg0 : i32, i32
  }
  func.func @transform_1(%arg0: i32) -> (i32, i32, i32) {
    %c0_i32 = arith.constant 0 : i32
    %c0_i32_0 = arith.constant 0 : i32
    %c0_i32_1 = arith.constant 0 : i32
    %c0_i32_2 = arith.constant 0 : i32
    return %c0_i32, %c0_i32_0, %c0_i32_1 : i32, i32, i32
  }
  func.func @transform_2(%arg0: i32) -> (i32, i32) {
    %c0_i32 = arith.constant 0 : i32
    %c0_i32_0 = arith.constant 0 : i32
    %c0_i32_1 = arith.constant 0 : i32
    return %c0_i32, %c0_i32_0 : i32, i32
  }
  func.func @transform_3(%arg0: i32) -> (i32, i32) {
    %c0_i32 = arith.constant 0 : i32
    %c0_i32_0 = arith.constant 0 : i32
    %c0_i32_1 = arith.constant 0 : i32
    return %c0_i32, %c0_i32_0 : i32, i32
  }
  func.func @transform_4(%arg0: i32) -> (i32, i32) {
    %c0_i32 = arith.constant 0 : i32
    %c0_i32_0 = arith.constant 0 : i32
    %c0_i32_1 = arith.constant 0 : i32
    return %c0_i32, %c0_i32_0 : i32, i32
  }
  func.func @transform_5(%arg0: i32) -> (i32, i32, i32) {
    %c0_i32 = arith.constant 0 : i32
    %c0_i32_0 = arith.constant 0 : i32
    %c0_i32_1 = arith.constant 0 : i32
    %c0_i32_2 = arith.constant 0 : i32
    return %c0_i32, %c0_i32_0, %c0_i32_1 : i32, i32, i32
  }
  func.func @transform_6(%arg0: i32) -> (i32, i32) {
    %c0_i32 = arith.constant 0 : i32
    %c0_i32_0 = arith.constant 0 : i32
    %c0_i32_1 = arith.constant 0 : i32
    return %c0_i32, %c0_i32_0 : i32, i32
  }
  func.func @transform_7(%arg0: i32) -> (i32, i32) {
    %c0_i32 = arith.constant 0 : i32
    %c0_i32_0 = arith.constant 0 : i32
    %c0_i32_1 = arith.constant 0 : i32
    return %c0_i32, %c0_i32_0 : i32, i32
  }
  func.func @transform_8(%arg0: i32) -> (i32, i32) {
    %c0_i32 = arith.constant 0 : i32
    %c0_i32_0 = arith.constant 0 : i32
    return %c0_i32, %arg0 : i32, i32
  }
}

</mosaic_0001>

<bundles_post_ra>
// kernel: _psa_call.1
= control target key start
LH: loop header
LB: loop body
LE: loop exit
PB: predicated region body
PF: predicated region fallthrough
CT: control target
= control target key end

     0   :  { %s1998_s11 = smov 4   ;;  %s1999_s14 = smov 1   ;;  %vm66_vm0 = vcmask 31744   ;;  %vm76_vm1 = vcmask 293888   ;;  %vm187_vm2 = vcmask 523264   ;;  %vm1150_vm3 = vcmask 261120   ;;  %s2762_s0 = inlined_call_operand.vmem [shape: bf16[64,32], index: 0, kind: input, shape index: {}]   ;;  %s2763_s5 = inlined_call_operand.vmem [shape: bf16[9,1,32], index: 5, kind: input, shape index: {}]   ;;  %s2764_s1 = inlined_call_operand.vmem [shape: bf16[9,64,64], index: 1, kind: input, shape index: {}]   ;;  %s2765_s2 = inlined_call_operand.vmem [shape: f32[64,1], index: 2, kind: input, shape index: {}]   ;;  %s2766_s6 = inlined_call_operand.vmem [shape: bf16[32,2], index: 6, kind: input, shape index: {}]   ;;  %s2767_s3 = inlined_call_operand.vmem [shape: f32[16,64], index: 3, kind: input, shape index: {}]   ;;  %s2768_s4 = inlined_call_operand.vmem [shape: f32[64,16], index: 4, kind: input, shape index: {}]   ;;  %s2769_s7 = inlined_call_operand.vmem [shape: bf16[2,32], index: 7, kind: input, shape index: {}]   ;;  %s2770_s8 = inlined_call_operand.vmem [shape: f32[64,32], index: 8, kind: output, shape index: {}]  }
   0x1   :  { %v2062_v0 = vld [vmem:[%s2762_s0 + $0x18] sm:$0xff]  ;;  %v1592_v1 = vld [vmem:[%s2763_s5 + $0x1] sm:$0x1]  ;;  %v2077_v6 = vld [vmem:[%s2762_s0 + $0x10] sm:$0xff]  ;;  %s2000_s20 = smov 127   ;;  %s2001_s23 = smov 2  }
   0x2   :  { %v122_v2 = vpack.i.b16 %v1592_v1, %v1592_v1  ;;  %v2070_v3 = vld [vmem:[%s2762_s0] sm:$0xff]  ;;  %64 = vrot.lane.b32.xlu0 %v2062_v0, %s1998_s11  ;;  %v2083_v7 = vld [vmem:[%s2762_s0 + $0x8] sm:$0xff]  ;;  %s2002_s24 = smov 3   ;;  %s2003_s25 = smov 126   ;;  %vm1241_vm4 = vcmask 130048   ;;  %vm1523_vm9 = vcmask 1040384  }
   0x3   :  { %58 = vrot.lane.b32.xlu2 %v2070_v3, %s1998_s11  ;;  %v85_v8 = vld [vmem:[%s2763_s5] sm:$0x1]  ;;  %v1641_v17 = vld [vmem:[%s2763_s5 + $0x2] sm:$0x1]  ;;  %v1670_v43 = vld [vmem:[%s2763_s5 + $0x3] sm:$0x1] }
   0x4   :  { %v124_v4 = vperm.slane %v122_v2, 0  ;;  %v87_v9 = vpack.i.b16 %v85_v8, %v85_v8  ;;  %v293_v24 = vpack.i.b16 %v1641_v17, %v1641_v17  ;;  %v410_v50 = vpack.i.b16 %v1670_v43, %v1670_v43  ;;  %s2004_s28 = smov 125   ;;  %s2007_s15 = smov 8  }
   0x5   :  { %s2008_s16 = smov 5   ;;  %s2009_s21 = smov 121  }
   0x6   :  { %v125_v5 = vunpack.c.l.bf16 %v124_v4  ;;  %v89_v10 = vperm.slane %v87_v9, 0  ;;  %v295_v31 = vperm.slane %v293_v24, 0  ;;  %v412_v59 = vperm.slane %v410_v50, 0  ;;  %s2010_s26 = smov 122   ;;  %s2011_s13 = smov 123  }
   0x8   :  { %127 = vrot.lane.b32.xlu1 %v125_v5, %s1999_s14  ;;  %v2090_v13 = vunpack.c.l.bf16 %v89_v10  ;;  %v296_v42 = vunpack.c.l.bf16 %v295_v31  ;;  %v413_v61 = vunpack.c.l.bf16 %v412_v59  ;;  %s2006_s14 = smov 7  }
   0xa   :  { %62 = vrot.lane.b32.xlu0 %v2077_v6, %s1998_s11 }
  0x10   :  { %60 = vrot.lane.b32.xlu1 %v2083_v7, %s1998_s11  ;;  %s2005_s11 = smov 6  }
  0x5d   :  { %v59_v18 = vpop.permute.xlu2 %58 }
  0x5e   :  { %v69_v26 = vsel %vm66_vm0, 0, %v59_v18  ;;  %v1756_v18 = vld [vmem:[%s2763_s5 + $0x6] sm:$0x1] }
  0x5f   :  { %v77_v32 = vsel %vm76_vm1, %v69_v26, 0  ;;  %v726_v26 = vpack.i.b16 %v1756_v18, %v1756_v18 }
  0x60   :  { %v2121_v40 = vunpack.c.l.bf16 %v77_v32  ;;  %v2127_v44 = vunpack.c.h.bf16 %v77_v32 }
  0x62   :  { %v99_v63 = vmul.f32 %v2090_v13, %v2121_v40  ;;  %v100_v1 = vmul.f32 %v2090_v13, %v2127_v44 }
  0x64   :  { %v107_v2 = vpack.c.bf16 %v100_v1, %v99_v63 }
  0x74   :  { %v65_v11 = vpop.permute.xlu0 %64 }
  0x75   :  { %v75_v12 = vsel %vm66_vm0, 0, %v65_v11 }
  0x76   :  { %v83_v14 = vsel %vm76_vm1, %v75_v12, 0 }
  0x77   :  { %v2093_v15 = vunpack.c.l.bf16 %v83_v14  ;;  %v2095_v16 = vunpack.c.h.bf16 %v83_v14 }
  0x79   :  { %v105_v20 = vmul.f32 %v2090_v13, %v2093_v15  ;;  %v106_v21 = vmul.f32 %v2090_v13, %v2095_v16 }
  0x7a   :  { %v128_v19 = vpop.permute.xlu1 %127 }
  0x7b   :  { %v136_v22 = vmul.f32 %v128_v19, %v2093_v15  ;;  %v137_v23 = vmul.f32 %v128_v19, %v2095_v16  ;;  %v110_v25 = vpack.c.bf16 %v106_v21, %v105_v20  ;;  %v130_v55 = vmul.f32 %v128_v19, %v2121_v40 }
  0x7c   :  { %v63_v27 = vpop.permute.xlu0 %62  ;;  %v131_v56 = vmul.f32 %v128_v19, %v2127_v44 }
  0x7d   :  { %v141_v28 = vpack.c.bf16 %v137_v23, %v136_v22  ;;  %v73_v29 = vsel %vm66_vm0, 0, %v63_v27  ;;  %265 = vmatpush.bf16.msra.mxu1 %v110_v25 }
  0x7e   :  { %v81_v30 = vsel %vm76_vm1, %v73_v29, 0  ;;  %v138_v60 = vpack.c.bf16 %v131_v56, %v130_v55  ;;  %v728_v29 = vperm.slane %v726_v26, 0  ;;  %v1885_v56 = vld [vmem:[%s2764_s1 + $0x20] sm:$0xff] }
  0x7f   :  { %181 = vrot.lane.b32.xlu2 %v141_v28, %s2000_s20  ;;  %v2111_v33 = vunpack.c.l.bf16 %v81_v30  ;;  %v2113_v34 = vunpack.c.h.bf16 %v81_v30  ;;  %v1785_v30 = vld [vmem:[%s2763_s5 + $0x7] sm:$0x1] }
  0x80   :  { %v1897_v26 = vld [vmem:[%s2764_s1 + $0x80] sm:$0xff] }
  0x81   :  { %v134_v36 = vmul.f32 %v128_v19, %v2111_v33  ;;  %v135_v37 = vmul.f32 %v128_v19, %v2113_v34  ;;  %v103_v38 = vmul.f32 %v2090_v13, %v2111_v33  ;;  %v104_v39 = vmul.f32 %v2090_v13, %v2113_v34 }
  0x82   :  { %v61_v35 = vpop.permute.xlu1 %60 }
  0x83   :  { %v71_v41 = vsel %vm66_vm0, 0, %v61_v35  ;;  %v140_v46 = vpack.c.bf16 %v135_v37, %v134_v36  ;;  %v109_v47 = vpack.c.bf16 %v104_v39, %v103_v38  ;;  %v1814_v36 = vld [vmem:[%s2763_s5 + $0x8] sm:$0x1]  ;;  %v843_v37 = vpack.i.b16 %v1785_v30, %v1785_v30 }
  0x84   :  { %v79_v45 = vsel %vm76_vm1, %v71_v41, 0  ;;  %v729_v38 = vunpack.c.l.bf16 %v728_v29  ;;  %v960_v39 = vpack.i.b16 %v1814_v36, %v1814_v36  ;;  %v1893_v29 = vld [vmem:[%s2764_s1 + $0x60] sm:$0xff] }
  0x85   :  { %v2130_v48 = vunpack.c.l.bf16 %v79_v45  ;;  %v2132_v49 = vunpack.c.h.bf16 %v79_v45  ;;  %179 = vrot.lane.b32.xlu0 %v140_v46, %s2000_s20  ;;  %266 = vmatpush.bf16.msra.mxu1 %v109_v47  ;;  %v1727_v45 = vld [vmem:[%s2763_s5 + $0x5] sm:$0x1] }
  0x86   :  { %v962_v43 = vperm.slane %v960_v39, 0 }
  0x87   :  { %298 = vrot.lane.b32.xlu2 %v296_v42, %s2001_s23  ;;  %v132_v51 = vmul.f32 %v128_v19, %v2130_v48  ;;  %v133_v52 = vmul.f32 %v128_v19, %v2132_v49  ;;  %v101_v53 = vmul.f32 %v2090_v13, %v2130_v48  ;;  %v102_v54 = vmul.f32 %v2090_v13, %v2132_v49  ;;  %s2012_s23 = smov 120  }
  0x89   :  { %v139_v57 = vpack.c.bf16 %v133_v52, %v132_v51  ;;  %v108_v58 = vpack.c.bf16 %v102_v54, %v101_v53  ;;  %v963_v51 = vunpack.c.l.bf16 %v962_v43  ;;  %v1890_v43 = vld [vmem:[%s2764_s1 + $0x48] sm:$0xff] }
  0x8b   :  { %177 = vrot.lane.b32.xlu1 %v139_v57, %s2000_s20  ;;  %267 = vmatpush.bf16.msra.mxu1 %v108_v58  ;;  %v1886_v58 = vld [vmem:[%s2764_s1 + $0x28] sm:$0xff] }
  0x8d   :  { %175 = vrot.lane.b32.xlu0 %v138_v60, %s2000_s20 }
  0x8f   :  { %268 = vmatpush.bf16.msra.mxu1 %v107_v2 }
  0x93   :  { %415 = vrot.lane.b32.xlu1 %v413_v61, %s2002_s24  ;;  %v1887_v61 = vld [vmem:[%s2764_s1 + $0x30] sm:$0xff] }
  0xd9   :  { %v182_v62 = vpop.permute.xlu2 %181 }
  0xda   :  { %204 = vmatpush.bf16.msra.mxu0 %v182_v62 }
  0xe1   :  { %v299_v4 = vpop.permute.xlu2 %298 }
  0xe2   :  { %v307_v5 = vmul.f32 %v299_v4, %v2093_v15  ;;  %v308_v8 = vmul.f32 %v299_v4, %v2095_v16  ;;  %v305_v9 = vmul.f32 %v299_v4, %v2111_v33  ;;  %v306_v10 = vmul.f32 %v299_v4, %v2113_v34 }
  0xe3   :  { %v303_v31 = vmul.f32 %v299_v4, %v2130_v48  ;;  %v301_v32 = vmul.f32 %v299_v4, %v2121_v40  ;;  %v302_v35 = vmul.f32 %v299_v4, %v2127_v44 }
  0xe4   :  { %v312_v11 = vpack.c.bf16 %v308_v8, %v307_v5  ;;  %v311_v12 = vpack.c.bf16 %v306_v10, %v305_v9  ;;  %v1888_v8 = vld [vmem:[%s2764_s1 + $0x38] sm:$0xff] }
  0xe5   :  { %v309_v42 = vpack.c.bf16 %v302_v35, %v301_v32 }
  0xe6   :  { %352 = vrot.lane.b32.xlu2 %v312_v11, %s2003_s25  ;;  %350 = vrot.lane.b32.xlu1 %v311_v12, %s2003_s25 }
  0xf7   :  { %v180_v14 = vpop.permute.xlu0 %179 }
  0xf8   :  { %205 = vmatpush.bf16.msra.mxu0 %v180_v14 }
  0xfd   :  { %v178_v13 = vpop.permute.xlu1 %177 }
  0xfe   :  { %206 = vmatpush.bf16.msra.mxu0 %v178_v13 }
  0xff   :  { %v176_v17 = vpop.permute.xlu0 %175 }
 0x102   :  { %207 = vmatpush.bf16.msra.mxu0 %v176_v17 }
 0x105   :  { %v416_v19 = vpop.permute.xlu1 %415  ;;  %1617 = vmatmul.msk.bf16.vlgmr.msra.gmra.mxu0 %vm187_vm2, %v1885_v56 }
 0x106   :  { %573 = vmatpush.bf16.msrb.mxu0 %v2062_v0  ;;  %v424_v20 = vmul.f32 %v416_v19, %v2093_v15  ;;  %v425_v21 = vmul.f32 %v416_v19, %v2095_v16  ;;  %v422_v22 = vmul.f32 %v416_v19, %v2111_v33  ;;  %v423_v23 = vmul.f32 %v416_v19, %v2113_v34 }
 0x107   :  { %v420_v24 = vmul.f32 %v416_v19, %v2130_v48  ;;  %v421_v25 = vmul.f32 %v416_v19, %v2132_v49  ;;  %v418_v46 = vmul.f32 %v416_v19, %v2121_v40  ;;  %v419_v47 = vmul.f32 %v416_v19, %v2127_v44 }
 0x108   :  { %v429_v0 = vpack.c.bf16 %v425_v21, %v424_v20  ;;  %v428_v27 = vpack.c.bf16 %v423_v23, %v422_v22  ;;  %v1889_v22 = vld [vmem:[%s2764_s1 + $0x40] sm:$0xff] }
 0x109   :  { %v427_v28 = vpack.c.bf16 %v421_v25, %v420_v24  ;;  %v426_v52 = vpack.c.bf16 %v419_v47, %v418_v46  ;;  %v1881_v23 = vld [vmem:[%s2764_s1] sm:$0xff] }
 0x10a   :  { %574 = vmatpush.bf16.msrb.mxu0 %v2077_v6  ;;  %469 = vrot.lane.b32.xlu0 %v429_v0, %s2004_s28  ;;  %v304_v6 = vmul.f32 %v299_v4, %v2132_v49 }
 0x10b   :  { %467 = vrot.lane.b32.xlu2 %v428_v27, %s2004_s28  ;;  %465 = vrot.lane.b32.xlu1 %v427_v28, %s2004_s28 }
 0x10c   :  { %v310_v41 = vpack.c.bf16 %v304_v6, %v303_v31  ;;  %1637 = vmatmul.msk.bf16.vlgmr.msra.gmra.mxu1 %vm187_vm2, %v1881_v23 }
 0x10e   :  { %575 = vmatpush.bf16.msrb.mxu0 %v2083_v7  ;;  %v845_v7 = vperm.slane %v843_v37, 0 }
 0x110   :  { %v846_v50 = vunpack.c.l.bf16 %v845_v7 }
 0x112   :  { %576 = vmatpush.bf16.msrb.mxu0 %v2070_v3  ;;  %348 = vrot.lane.b32.xlu0 %v310_v41, %s2003_s25  ;;  %v609_v3 = vpack.i.b16 %v1727_v45, %v1727_v45  ;;  %v1882_v45 = vld [vmem:[%s2764_s1 + $0x8] sm:$0xff] }
 0x113   :  { %346 = vrot.lane.b32.xlu2 %v309_v42, %s2003_s25  ;;  %731 = vrot.lane.b32.xlu1 %v729_v38, %s2005_s11 }
 0x114   :  { %v611_v53 = vperm.slane %v609_v3, 0 }
 0x115   :  { %1618 = vmatmul.msk.bf16.gmra.mxu0 %vm187_vm2, %v1886_v58 }
 0x116   :  { %v612_v54 = vunpack.c.l.bf16 %v611_v53 }
 0x11a   :  { %463 = vrot.lane.b32.xlu0 %v426_v52, %s2004_s28  ;;  %v1894_v52 = vld [vmem:[%s2764_s1 + $0x68] sm:$0xff] }
 0x11b   :  { %848 = vrot.lane.b32.xlu2 %v846_v50, %s2006_s14  ;;  %965 = vrot.lane.b32.xlu1 %v963_v51, %s2007_s15  ;;  %v1898_v50 = vld [vmem:[%s2764_s1 + $0x88] sm:$0xff] }
 0x11c   :  { %1638 = vmatmul.msk.bf16.gmra.mxu1 %vm187_vm2, %v1882_v45 }
 0x122   :  { %614 = vrot.lane.b32.xlu0 %v612_v54, %s2008_s16 }
 0x125   :  { %1619 = vmatmul.msk.bf16.gmra.mxu0 %vm187_vm2, %v1887_v61 }
 0x135   :  { %1620 = vmatmul.msk.bf16.gmra.mxu0 %vm187_vm2, %v1888_v8 }
 0x140   :  { %v353_v55 = vpop.permute.xlu2 %352 }
 0x141   :  { %374 = vmatpush.bf16.msra.mxu2 %v353_v55 }
 0x145   :  { %1723 = vmatmul.msk.bf16.vlgmr.msrb.gmra.mxu0 %vm187_vm2, %v1897_v26 }
 0x155   :  { %1724 = vmatmul.msk.bf16.gmra.mxu0 %vm187_vm2, %v1898_v50 }
 0x158   :  { %v351_v57 = vpop.permute.xlu1 %350 }
 0x159   :  { %375 = vmatpush.bf16.msra.mxu2 %v351_v57 }
 0x165   :  { %v468_v59 = vpop.permute.xlu2 %467 }
 0x16d   :  { %v347_v60 = vpop.permute.xlu2 %346 }
 0x175   :  { %v2201_v62 = vpop.permute.xlu2 %848 }
 0x176   :  { %v857_v63 = vmul.f32 %v2201_v62, %v2093_v15  ;;  %v858_v1 = vmul.f32 %v2201_v62, %v2095_v16  ;;  %v855_v4 = vmul.f32 %v2201_v62, %v2111_v33  ;;  %v856_v5 = vmul.f32 %v2201_v62, %v2113_v34 }
 0x177   :  { %v853_v12 = vmul.f32 %v2201_v62, %v2130_v48  ;;  %v854_v14 = vmul.f32 %v2201_v62, %v2132_v49 }
 0x178   :  { %v862_v2 = vpack.c.bf16 %v858_v1, %v857_v63  ;;  %v861_v11 = vpack.c.bf16 %v856_v5, %v855_v4  ;;  %v1891_v63 = vld [vmem:[%s2764_s1 + $0x50] sm:$0xff] }
 0x179   :  { %v860_v20 = vpack.c.bf16 %v854_v14, %v853_v12  ;;  %v1883_v1 = vld [vmem:[%s2764_s1 + $0x10] sm:$0xff] }
 0x17a   :  { %902 = vrot.lane.b32.xlu0 %v862_v2, %s2009_s21  ;;  %v1895_v4 = vld [vmem:[%s2764_s1 + $0x70] sm:$0xff]  ;;  %1639 = vmatmul.msk.bf16.gmra.mxu1 %vm187_vm2, %v1883_v1 }
 0x17b   :  { %v1907_v1 = vld [vmem:[%s2764_s1 + $0xd0] sm:$0xff] }
 0x17c   :  { %v470_v9 = vpop.permute.xlu0 %469 }
 0x17d   :  { %v466_v10 = vpop.permute.xlu1 %465  ;;  %491 = vmatpush.bf16.msra.mxu3 %v470_v9  ;;  %v1892_v9 = vld [vmem:[%s2764_s1 + $0x58] sm:$0xff] }
 0x181   :  { %492 = vmatpush.bf16.msra.mxu3 %v468_v59 }
 0x182   :  { %900 = vrot.lane.b32.xlu0 %v861_v11, %s2009_s21  ;;  %v1900_v11 = vld [vmem:[%s2764_s1 + $0x98] sm:$0xff] }
 0x184   :  { %v349_v13 = vpop.permute.xlu0 %348 }
 0x185   :  { %v732_v17 = vpop.permute.xlu1 %731  ;;  %376 = vmatpush.bf16.msra.mxu2 %v349_v13  ;;  %493 = vmatpush.bf16.msra.mxu3 %v466_v10  ;;  %v1884_v10 = vld [vmem:[%s2764_s1 + $0x18] sm:$0xff] }
 0x186   :  { %v740_v18 = vmul.f32 %v732_v17, %v2093_v15  ;;  %v741_v19 = vmul.f32 %v732_v17, %v2095_v16  ;;  %v734_v24 = vmul.f32 %v732_v17, %v2121_v40  ;;  %v735_v25 = vmul.f32 %v732_v17, %v2127_v44 }
 0x187   :  { %v738_v27 = vmul.f32 %v732_v17, %v2111_v33  ;;  %v739_v28 = vmul.f32 %v732_v17, %v2113_v34  ;;  %v736_v32 = vmul.f32 %v732_v17, %v2130_v48  ;;  %v737_v35 = vmul.f32 %v732_v17, %v2132_v49 }
 0x188   :  { %v745_v21 = vpack.c.bf16 %v741_v19, %v740_v18  ;;  %v742_v30 = vpack.c.bf16 %v735_v25, %v734_v24 }
 0x189   :  { %377 = vmatpush.bf16.msra.mxu2 %v347_v60  ;;  %v744_v31 = vpack.c.bf16 %v739_v28, %v738_v27  ;;  %v743_v7 = vpack.c.bf16 %v737_v35, %v736_v32  ;;  %v270_v28 = vpop.f32.mrf.mxu1 }
 0x18a   :  { %898 = vrot.lane.b32.xlu0 %v860_v20, %s2009_s21  ;;  %785 = vrot.lane.b32.xlu2 %v745_v21, %s2010_s26 }
 0x18b   :  { %1640 = vmatmul.msk.bf16.gmra.mxu1 %vm187_vm2, %v1884_v10 }
 0x18c   :  { %v464_v0 = vpop.permute.xlu0 %463  ;;  %1666 = vmatmul.msk.bf16.vlgmr.msra.gmra.mxu2 %vm187_vm2, %v1889_v22 }
 0x18d   :  { %494 = vmatpush.bf16.msra.mxu3 %v464_v0  ;;  %v966_v54 = vpop.permute.xlu1 %965  ;;  %v1905_v0 = vld [vmem:[%s2764_s1 + $0xc0] sm:$0xff] }
 0x18e   :  { %v974_v56 = vmul.f32 %v966_v54, %v2093_v15  ;;  %v975_v57 = vmul.f32 %v966_v54, %v2095_v16  ;;  %v972_v58 = vmul.f32 %v966_v54, %v2111_v33  ;;  %v973_v59 = vmul.f32 %v966_v54, %v2113_v34 }
 0x18f   :  { %v969_v2 = vmul.f32 %v966_v54, %v2127_v44 }
 0x190   :  { %1695 = vmatmul.msk.bf16.vlgmr.msra.gmra.mxu3 %vm187_vm2, %v1893_v29  ;;  %v979_v60 = vpack.c.bf16 %v975_v57, %v974_v56  ;;  %v978_v61 = vpack.c.bf16 %v973_v59, %v972_v58  ;;  %v1074_v57 = vld [vmem:[%s2765_s2] sm:$0xff]  ;;  %v1077_v58 = vld [vmem:[%s2765_s2 + $0x18] sm:$0xff] }
 0x191   :  { %v2335_v35 = vpop.f32.mrf.mxu1 }
 0x192   :  { %779 = vrot.lane.b32.xlu0 %v742_v30, %s2010_s26  ;;  %783 = vrot.lane.b32.xlu2 %v744_v31, %s2010_s26 }
 0x194   :  { %v615_v6 = vpop.permute.xlu0 %614 }
 0x195   :  { %v623_v36 = vmul.f32 %v615_v6, %v2093_v15  ;;  %v624_v37 = vmul.f32 %v615_v6, %v2095_v16  ;;  %v617_v38 = vmul.f32 %v615_v6, %v2121_v40  ;;  %v618_v39 = vmul.f32 %v615_v6, %v2127_v44 }
 0x196   :  { %v621_v46 = vmul.f32 %v615_v6, %v2111_v33  ;;  %v622_v47 = vmul.f32 %v615_v6, %v2113_v34  ;;  %v619_v3 = vmul.f32 %v615_v6, %v2130_v48  ;;  %v620_v51 = vmul.f32 %v615_v6, %v2132_v49  ;;  %v1899_v33 = vld [vmem:[%s2764_s1 + $0x90] sm:$0xff] }
 0x197   :  { %v628_v41 = vpack.c.bf16 %v624_v37, %v623_v36  ;;  %v625_v42 = vpack.c.bf16 %v618_v39, %v617_v38  ;;  %v851_v15 = vmul.f32 %v2201_v62, %v2121_v40  ;;  %v852_v16 = vmul.f32 %v2201_v62, %v2127_v44  ;;  %1725 = vmatmul.msk.bf16.gmra.mxu0 %vm187_vm2, %v1899_v33  ;;  %v1906_v37 = vld [vmem:[%s2764_s1 + $0xc8] sm:$0xff] }
 0x198   :  { %v627_v53 = vpack.c.bf16 %v622_v47, %v621_v46  ;;  %v626_v55 = vpack.c.bf16 %v620_v51, %v619_v3  ;;  %v968_v34 = vmul.f32 %v966_v54, %v2121_v40  ;;  %v970_v40 = vmul.f32 %v966_v54, %v2130_v48  ;;  %v1896_v48 = vld [vmem:[%s2764_s1 + $0x78] sm:$0xff]  ;;  %v1075_v46 = vld [vmem:[%s2765_s2 + $0x8] sm:$0xff] }
 0x199   :  { %668 = vrot.lane.b32.xlu1 %v628_v41, %s2011_s13  ;;  %v859_v5 = vpack.c.bf16 %v852_v16, %v851_v15  ;;  %v971_v44 = vmul.f32 %v966_v54, %v2132_v49  ;;  %v209_v49 = vpop.f32.mrf.mxu0  ;;  %v2013_v41 = vmov 0   ;;  %v275_v47 = vpop.f32.mrf.mxu1 }
 0x19a   :  { %662 = vrot.lane.b32.xlu0 %v625_v42, %s2011_s13  ;;  %781 = vrot.lane.b32.xlu2 %v743_v7, %s2010_s26  ;;  %v976_v62 = vpack.c.bf16 %v969_v2, %v968_v34  ;;  %v271_v30 = vadd.f32 %v270_v28, %v209_v49 }
 0x19b   :  { %v977_v8 = vpack.c.bf16 %v971_v44, %v970_v40  ;;  %1944 = vset.pattern.permute.xlu1 %v2013_v41  ;;  %1943 = vset.pattern.permute.xlu0 %v2013_v41 }
 0x19c   :  { %1667 = vmatmul.msk.bf16.gmra.mxu2 %vm187_vm2, %v1890_v43  ;;  %1945 = vset.pattern.permute.xlu2 %v2013_v41 }
 0x1a0   :  { %1696 = vmatmul.msk.bf16.gmra.mxu3 %vm187_vm2, %v1894_v52  ;;  %v1901_v52 = vld [vmem:[%s2764_s1 + $0xa0] sm:$0xff] }
 0x1a1   :  { %666 = vrot.lane.b32.xlu1 %v627_v53, %s2011_s13  ;;  %v2319_v12 = vpop.f32.mrf.mxu0 }
 0x1a2   :  { %664 = vrot.lane.b32.xlu2 %v626_v55, %s2011_s13  ;;  %1084 = vperm.xlu0 %1943, %v1074_v57  }
 0x1a7   :  { %1726 = vmatmul.msk.bf16.gmra.mxu0 %vm187_vm2, %v1900_v11  ;;  %v1913_v11 = vld [vmem:[%s2764_s1 + $0x100] sm:$0xff] }
 0x1a9   :  { %1019 = vrot.lane.b32.xlu1 %v979_v60, %s2012_s23  ;;  %v214_v14 = vpop.f32.mrf.mxu0  ;;  %v2362_v60 = vpop.f32.mrf.mxu1 }
 0x1aa   :  { %1017 = vrot.lane.b32.xlu2 %v978_v61, %s2012_s23  ;;  %v276_v3 = vadd.f32 %v275_v47, %v214_v14  ;;  %v1904_v47 = vld [vmem:[%s2764_s1 + $0xb8] sm:$0xff] }
 0x1ac   :  { %1668 = vmatmul.msk.bf16.gmra.mxu2 %vm187_vm2, %v1891_v63  ;;  %v1909_v63 = vld [vmem:[%s2764_s1 + $0xe0] sm:$0xff] }
 0x1b0   :  { %1697 = vmatmul.msk.bf16.gmra.mxu3 %vm187_vm2, %v1895_v4  ;;  %v1079_v4 = vld [vmem:[%s2765_s2 + $0x28] sm:$0xff] }
 0x1b1   :  { %896 = vrot.lane.b32.xlu1 %v859_v5, %s2009_s21  ;;  %v2321_v17 = vpop.f32.mrf.mxu0  ;;  %v1080_v5 = vld [vmem:[%s2765_s2 + $0x30] sm:$0xff]  ;;  %1109 = vperm.xlu0 %1943, %v1079_v4  }
 0x1b2   :  { %1013 = vrot.lane.b32.xlu2 %v976_v62, %s2012_s23 }
 0x1b9   :  { %1015 = vrot.lane.b32.xlu1 %v977_v8, %s2012_s23  ;;  %v2323_v20 = vpop.f32.mrf.mxu0  ;;  %v1902_v8 = vld [vmem:[%s2764_s1 + $0xa8] sm:$0xff] }
 0x1bc   :  { %1669 = vmatmul.msk.bf16.gmra.mxu2 %vm187_vm2, %v1892_v9 }
 0x1c0   :  { %1698 = vmatmul.msk.bf16.gmra.mxu3 %vm187_vm2, %v1896_v48 }
 0x1c1   :  { %v2325_v23 = vpop.f32.mrf.mxu0  ;;  %1089 = vperm.xlu1 %1944, %v1075_v46   ;;  %v1081_v46 = vld [vmem:[%s2765_s2 + $0x38] sm:$0xff] }
 0x1c9   :  { %v2327_v25 = vpop.f32.mrf.mxu0  ;;  %1099 = vperm.xlu1 %1944, %v1077_v58   ;;  %v1917_v58 = vld [vmem:[%s2766_s6] sm:$0xff] }
 0x1d1   :  { %v2332_v27 = vpop.f32.mrf.mxu0  ;;  %1114 = vperm.xlu1 %1944, %v1080_v5  }
 0x1d9   :  { %v578_v31 = vpop.f32.mrf.mxu0 }
 0x1e1   :  { %v2340_v7 = vpop.f32.mrf.mxu0 }
 0x1e4   :  { %v786_v13 = vpop.permute.xlu2 %785 }
 0x1e5   :  { %807 = vmatpush.bf16.msrb.mxu2 %v786_v13 }
 0x1e9   :  { %v583_v54 = vpop.f32.mrf.mxu0 }
 0x1ec   :  { %v903_v18 = vpop.permute.xlu0 %902  ;;  %v784_v19 = vpop.permute.xlu2 %783 }
 0x1ed   :  { %924 = vmatpush.bf16.msrb.mxu3 %v903_v18  ;;  %808 = vmatpush.bf16.msrb.mxu2 %v784_v19  ;;  %v1910_v18 = vld [vmem:[%s2764_s1 + $0xe8] sm:$0xff]  ;;  %v1908_v19 = vld [vmem:[%s2764_s1 + $0xd8] sm:$0xff] }
 0x1f1   :  { %v2376_v2 = vpop.f32.mrf.mxu0 }
 0x1f4   :  { %v901_v21 = vpop.permute.xlu0 %900  ;;  %v782_v22 = vpop.permute.xlu2 %781 }
 0x1f5   :  { %925 = vmatpush.bf16.msrb.mxu3 %v901_v21  ;;  %809 = vmatpush.bf16.msrb.mxu2 %v782_v22 }
 0x1f7   :  { %v280_v62 = vpop.f32.mrf.mxu1 }
 0x1f8   :  { %v281_v40 = vadd.f32 %v280_v62, %v2323_v20 }
 0x1fc   :  { %v899_v24 = vpop.permute.xlu0 %898  ;;  %v665_v42 = vpop.permute.xlu2 %664 }
 0x1fd   :  { %926 = vmatpush.bf16.msrb.mxu3 %v899_v24 }
 0x1ff   :  { %v2394_v13 = vpop.f32.mrf.mxu1 }
 0x204   :  { %v780_v26 = vpop.permute.xlu0 %779  ;;  %v1018_v55 = vpop.permute.xlu2 %1017 }
 0x205   :  { %810 = vmatpush.bf16.msrb.mxu2 %v780_v26  ;;  %v1076_v26 = vld [vmem:[%s2765_s2 + $0x10] sm:$0xff] }
 0x206   :  { %1094 = vperm.xlu2 %1945, %v1076_v26  }
 0x208   :  { %1781 = vmatmul.msk.bf16.vlgmr.msrb.gmra.mxu2 %vm187_vm2, %v1905_v0  ;;  %v285_v0 = vpop.f32.mrf.mxu1 }
 0x209   :  { %v286_v28 = vadd.f32 %v285_v0, %v2327_v25  ;;  %v1911_v25 = vld [vmem:[%s2764_s1 + $0xf0] sm:$0xff] }
 0x20b   :  { %v669_v29 = vpop.permute.xlu1 %668 }
 0x20c   :  { %690 = vmatpush.bf16.msrb.mxu1 %v669_v29  ;;  %v663_v50 = vpop.permute.xlu0 %662  ;;  %v1014_v10 = vpop.permute.xlu2 %1013  ;;  %v1903_v29 = vld [vmem:[%s2764_s1 + $0xb0] sm:$0xff] }
 0x20f   :  { %v379_v6 = vpop.f32.mrf.mxu2 }
 0x210   :  { %v399_v32 = vadd.f32 %v379_v6, %v271_v30  ;;  %v1914_v6 = vld [vmem:[%s2764_s1 + $0x108] sm:$0xff] }
 0x213   :  { %v667_v36 = vpop.permute.xlu1 %666  ;;  %v496_v38 = vpop.f32.mrf.mxu3 }
 0x214   :  { %691 = vmatpush.bf16.msrb.mxu1 %v667_v36  ;;  %v516_v39 = vadd.f32 %v496_v38, %v399_v32  ;;  %v588_v14 = vpop.f32.mrf.mxu0  ;;  %v1078_v38 = vld [vmem:[%s2765_s2 + $0x20] sm:$0xff] }
 0x215   :  { %1104 = vperm.xlu2 %1945, %v1078_v38  }
 0x216   :  { %v2342_v43 = vadd.f32 %v578_v31, %v516_v39 }
 0x217   :  { %v2345_v45 = vpop.f32.mrf.mxu2 }
 0x218   :  { %1782 = vmatmul.msk.bf16.gmra.mxu2 %vm187_vm2, %v1906_v37  ;;  %692 = vmatpush.bf16.msrb.mxu1 %v665_v42 }
 0x21b   :  { %v1020_v51 = vpop.permute.xlu1 %1019  ;;  %v2353_v53 = vpop.f32.mrf.mxu3 }
 0x21c   :  { %693 = vmatpush.bf16.msrb.mxu1 %v663_v50  ;;  %1041 = vmatpush.bf16.msra.mxu0 %v1020_v51  ;;  %v2418_v31 = vpop.f32.mrf.mxu0  ;;  %v1915_v50 = vld [vmem:[%s2764_s1 + $0x110] sm:$0xff]  ;;  %v1916_v51 = vld [vmem:[%s2764_s1 + $0x118] sm:$0xff] }
 0x21d   :  { %1119 = vperm.xlu2 %1945, %v1081_v46  }
 0x21f   :  { %1752 = vmatmul.msk.bf16.vlgmr.msrb.gmra.mxu1 %vm187_vm2, %v1901_v52  ;;  %v384_v56 = vpop.f32.mrf.mxu2  ;;  %v2453_v52 = vpop.f32.mrf.mxu1 }
 0x220   :  { %1042 = vmatpush.bf16.msra.mxu0 %v1018_v55  ;;  %v401_v59 = vadd.f32 %v384_v56, %v276_v3  ;;  %v1912_v3 = vld [vmem:[%s2764_s1 + $0xf8] sm:$0xff]  ;;  %v1918_v55 = vld [vmem:[%s2766_s6 + $0x8] sm:$0xff] }
 0x221   :  { %1169 = vmatpush.bf16.msra.mxu1 %v1918_v55 }
 0x223   :  { %v897_v61 = vpop.permute.xlu1 %896  ;;  %v501_v15 = vpop.f32.mrf.mxu3 }
 0x224   :  { %927 = vmatpush.bf16.msrb.mxu3 %v897_v61  ;;  %v518_v16 = vadd.f32 %v501_v15, %v401_v59  ;;  %v593_v41 = vpop.f32.mrf.mxu0  ;;  %v273_v61 = vadd.f32 %v2335_v35, %v2319_v12  ;;  %v278_v12 = vadd.f32 %v2362_v60, %v2321_v17 }
 0x225   :  { %1170 = vmatpush.bf16.msra.mxu1 %v1917_v58 }
 0x226   :  { %v2370_v33 = vadd.f32 %v583_v54, %v518_v16  ;;  %v400_v15 = vadd.f32 %v2345_v45, %v273_v61 }
 0x227   :  { %1810 = vmatmul.msk.bf16.vlgmr.msrb.gmra.mxu3 %vm187_vm2, %v1909_v63  ;;  %v2374_v34 = vpop.f32.mrf.mxu2 }
 0x228   :  { %1783 = vmatmul.msk.bf16.gmra.mxu2 %vm187_vm2, %v1907_v1  ;;  %v517_v5 = vadd.f32 %v2353_v53, %v400_v15 }
 0x22b   :  { %v1016_v44 = vpop.permute.xlu1 %1015  ;;  %v2388_v9 = vpop.f32.mrf.mxu3 }
 0x22c   :  { %1043 = vmatpush.bf16.msra.mxu0 %v1016_v44  ;;  %v2468_v16 = vpop.f32.mrf.mxu0 }
 0x22f   :  { %1753 = vmatmul.msk.bf16.gmra.mxu1 %vm187_vm2, %v1902_v8  ;;  %v389_v48 = vpop.f32.mrf.mxu2 }
 0x230   :  { %1044 = vmatpush.bf16.msra.mxu0 %v1014_v10  ;;  %v403_v49 = vadd.f32 %v389_v48, %v281_v40  ;;  %v599_v40 = vadd.f32 %v2340_v7, %v517_v5 }
 0x233   :  { %1839 = vmatmul.msk.bf16.vlgmr.msra.gmra.mxu0 %vm187_vm2, %v1913_v11  ;;  %v506_v20 = vpop.f32.mrf.mxu3  ;;  %v1090_v7 = vpop.permute.xlu1 %1089 }
 0x234   :  { %v520_v21 = vadd.f32 %v506_v20, %v403_v49  ;;  %v1085_v20 = vpop.permute.xlu0 %1084 }
 0x236   :  { %v2403_v22 = vadd.f32 %v588_v14, %v520_v21 }
 0x237   :  { %1811 = vmatmul.msk.bf16.gmra.mxu3 %vm187_vm2, %v1910_v18  ;;  %v2407_v24 = vpop.f32.mrf.mxu2  ;;  %v402_v18 = vadd.f32 %v2374_v34, %v278_v12 }
 0x238   :  { %1784 = vmatmul.msk.bf16.gmra.mxu2 %vm187_vm2, %v1908_v19 }
 0x23b   :  { %v2416_v30 = vpop.f32.mrf.mxu3 }
 0x23f   :  { %1754 = vmatmul.msk.bf16.gmra.mxu1 %vm187_vm2, %v1903_v29  ;;  %v394_v32 = vpop.f32.mrf.mxu2 }
 0x240   :  { %v405_v36 = vadd.f32 %v394_v32, %v286_v28  ;;  %v519_v28 = vadd.f32 %v2388_v9, %v402_v18  ;;  %v283_v9 = vadd.f32 %v2394_v13, %v2325_v23 }
 0x242   :  { %v601_v60 = vadd.f32 %v2376_v2, %v519_v28 }
 0x243   :  { %1840 = vmatmul.msk.bf16.gmra.mxu0 %vm187_vm2, %v1914_v6  ;;  %v511_v37 = vpop.f32.mrf.mxu3 }
 0x244   :  { %v522_v39 = vadd.f32 %v511_v37, %v405_v36 }
 0x246   :  { %v2431_v42 = vadd.f32 %v593_v41, %v522_v39 }
 0x247   :  { %1812 = vmatmul.msk.bf16.gmra.mxu3 %vm187_vm2, %v1911_v25  ;;  %v2455_v54 = vpop.f32.mrf.mxu2 }
 0x24b   :  { %v2463_v59 = vpop.f32.mrf.mxu3 }
 0x24f   :  { %1755 = vmatmul.msk.bf16.gmra.mxu1 %vm187_vm2, %v1904_v47  ;;  %v404_v47 = vadd.f32 %v2407_v24, %v283_v9 }
 0x251   :  { %v521_v58 = vadd.f32 %v2416_v30, %v404_v47  ;;  %v288_v30 = vadd.f32 %v2453_v52, %v2332_v27 }
 0x253   :  { %1841 = vmatmul.msk.bf16.gmra.mxu0 %vm187_vm2, %v1915_v50  ;;  %v603_v24 = vadd.f32 %v2418_v31, %v521_v58 }
 0x257   :  { %1813 = vmatmul.msk.bf16.gmra.mxu3 %vm187_vm2, %v1912_v3 }
 0x263   :  { %1842 = vmatmul.msk.bf16.gmra.mxu0 %vm187_vm2, %v1916_v51  ;;  %v1100_v51 = vpop.permute.xlu1 %1099 }
 0x28b   :  { %v812_v57 = vpop.f32.mrf.mxu2 }
 0x293   :  { %v814_v1 = vpop.f32.mrf.mxu2 }
 0x29b   :  { %v817_v8 = vpop.f32.mrf.mxu2 }
 0x29c   :  { %v695_v56 = vpop.f32.mrf.mxu1 }
 0x29d   :  { %v715_v44 = vadd.f32 %v695_v56, %v2342_v43 }
 0x29f   :  { %v832_v35 = vadd.f32 %v812_v57, %v715_v44 }
 0x2a3   :  { %v819_v43 = vpop.f32.mrf.mxu2 }
 0x2a4   :  { %v697_v63 = vpop.f32.mrf.mxu1 }
 0x2a5   :  { %v716_v11 = vadd.f32 %v697_v63, %v599_v40 }
 0x2a7   :  { %v833_v49 = vadd.f32 %v814_v1, %v716_v11 }
 0x2aa   :  { %v929_v4 = vpop.f32.mrf.mxu3 }
 0x2ab   :  { %v949_v45 = vadd.f32 %v929_v4, %v832_v35  ;;  %v822_v39 = vpop.f32.mrf.mxu2  ;;  %v1110_v35 = vpop.permute.xlu0 %1109 }
 0x2ac   :  { %v700_v62 = vpop.f32.mrf.mxu1 }
 0x2ad   :  { %v717_v34 = vadd.f32 %v700_v62, %v2370_v33  ;;  %v1095_v33 = vpop.permute.xlu2 %1094 }
 0x2af   :  { %v834_v38 = vadd.f32 %v817_v8, %v717_v34 }
 0x2b0   :  { %v1046_v10 = vpop.f32.mrf.mxu0 }
 0x2b1   :  { %v1066_v19 = vadd.f32 %v1046_v10, %v949_v45  ;;  %v406_v10 = vadd.f32 %v2455_v54, %v288_v30  ;;  %v1234_v30 = vld [vmem:[%s2768_s4 + $0x8] sm:$0xff] }
 0x2b2   :  { %v931_v48 = vpop.f32.mrf.mxu3 }
 0x2b3   :  { %v950_v53 = vadd.f32 %v931_v48, %v833_v49  ;;  %v2477_v29 = vadd.f32 %v1085_v20, %v1066_v19  ;;  %v824_v13 = vpop.f32.mrf.mxu2 }
 0x2b4   :  { %v702_v14 = vpop.f32.mrf.mxu1 }
 0x2b5   :  { %v718_v25 = vadd.f32 %v702_v14, %v601_v60  ;;  %v1105_v49 = vpop.permute.xlu2 %1104  ;;  %v523_v14 = vadd.f32 %v2463_v59, %v406_v10  ;;  %v1239_v10 = vld [vmem:[%s2768_s4 + $0x30] sm:$0xff] }
 0x2b7   :  { %v835_v41 = vadd.f32 %v819_v43, %v718_v25  ;;  %v605_v54 = vadd.f32 %v2468_v16, %v523_v14 }
 0x2b8   :  { %v1048_v21 = vpop.f32.mrf.mxu0 }
 0x2b9   :  { %v1067_v26 = vadd.f32 %v1048_v21, %v950_v53 }
 0x2ba   :  { %v934_v0 = vpop.f32.mrf.mxu3 }
 0x2bb   :  { %v2479_v6 = vadd.f32 %v1090_v7, %v1067_v26  ;;  %v951_v46 = vadd.f32 %v934_v0, %v834_v38  ;;  %v827_v12 = vpop.f32.mrf.mxu2 }
 0x2bc   :  { %v705_v32 = vpop.f32.mrf.mxu1 }
 0x2bd   :  { %v1130_v17 = vpack.c.bf16 %v2479_v6, %v2477_v29  ;;  %v719_v1 = vadd.f32 %v705_v32, %v2403_v22  ;;  %v1115_v32 = vpop.permute.xlu1 %1114 }
 0x2bf   :  { %1851 = vmatmul.msk.bf16.vlgmr.msra.gmra.mxu1 %vm1150_vm3, %v1130_v17  ;;  %v836_v62 = vadd.f32 %v822_v39, %v719_v1 }
 0x2c0   :  { %v1051_v36 = vpop.f32.mrf.mxu0 }
 0x2c1   :  { %v1068_v50 = vadd.f32 %v1051_v36, %v951_v46  ;;  %v1120_v36 = vpop.permute.xlu2 %1119 }
 0x2c2   :  { %v936_v37 = vpop.f32.mrf.mxu3 }
 0x2c3   :  { %v952_v3 = vadd.f32 %v936_v37, %v835_v41  ;;  %v2490_v61 = vadd.f32 %v1095_v33, %v1068_v50  ;;  %v829_v7 = vpop.f32.mrf.mxu2 }
 0x2c4   :  { %v707_v56 = vpop.f32.mrf.mxu1 }
 0x2c5   :  { %v720_v4 = vadd.f32 %v707_v56, %v603_v24 }
 0x2c7   :  { %v837_v44 = vadd.f32 %v824_v13, %v720_v4  ;;  %v1201_v13 = vld [vmem:[%s2767_s3 + $0x8] sm:$0xff] }
 0x2c8   :  { %v1053_v2 = vpop.f32.mrf.mxu0 }
 0x2c9   :  { %v1069_v55 = vadd.f32 %v1053_v2, %v952_v3 }
 0x2ca   :  { %v939_v57 = vpop.f32.mrf.mxu3 }
 0x2cb   :  { %v2492_v63 = vadd.f32 %v1100_v51, %v1069_v55  ;;  %v953_v8 = vadd.f32 %v939_v57, %v836_v62  ;;  %v1235_v62 = vld [vmem:[%s2768_s4 + $0x10] sm:$0xff] }
 0x2cc   :  { %v710_v40 = vpop.f32.mrf.mxu1 }
 0x2cd   :  { %v1131_v23 = vpack.c.bf16 %v2492_v63, %v2490_v61  ;;  %v721_v53 = vadd.f32 %v710_v40, %v2431_v42  ;;  %v1236_v40 = vld [vmem:[%s2768_s4 + $0x18] sm:$0xff] }
 0x2cf   :  { %1852 = vmatmul.msk.bf16.gmra.mxu1 %vm1150_vm3, %v1131_v23  ;;  %v838_v26 = vadd.f32 %v827_v12, %v721_v53  ;;  %v1200_v23 = vld [vmem:[%s2767_s3] sm:$0xff] }
 0x2d0   :  { %v1056_v15 = vpop.f32.mrf.mxu0 }
 0x2d1   :  { %v1070_v11 = vadd.f32 %v1056_v15, %v953_v8  ;;  %v1238_v8 = vld [vmem:[%s2768_s4 + $0x28] sm:$0xff] }
 0x2d2   :  { %v941_v5 = vpop.f32.mrf.mxu3 }
 0x2d3   :  { %v954_v48 = vadd.f32 %v941_v5, %v837_v44  ;;  %v2503_v18 = vadd.f32 %v1105_v49, %v1070_v11  ;;  %v1233_v5 = vld [vmem:[%s2768_s4] sm:$0xff]  ;;  %v1240_v11 = vld [vmem:[%s2768_s4 + $0x38] sm:$0xff] }
 0x2d4   :  { %v712_v52 = vpop.f32.mrf.mxu1  ;;  %v1237_v44 = vld [vmem:[%s2768_s4 + $0x20] sm:$0xff] }
 0x2d5   :  { %v722_v21 = vadd.f32 %v712_v52, %v605_v54 }
 0x2d7   :  { %v839_v59 = vadd.f32 %v829_v7, %v722_v21 }
 0x2d8   :  { %v1058_v31 = vpop.f32.mrf.mxu0 }
 0x2d9   :  { %v1071_v22 = vadd.f32 %v1058_v31, %v954_v48 }
 0x2da   :  { %v944_v45 = vpop.f32.mrf.mxu3 }
 0x2db   :  { %v2505_v19 = vadd.f32 %v1110_v35, %v1071_v22  ;;  %v955_v0 = vadd.f32 %v944_v45, %v838_v26 }
 0x2dd   :  { %v1132_v27 = vpack.c.bf16 %v2505_v19, %v2503_v18 }
 0x2df   :  { %1853 = vmatmul.msk.bf16.gmra.mxu1 %vm1150_vm3, %v1132_v27 }
 0x2e0   :  { %v1061_v20 = vpop.f32.mrf.mxu0 }
 0x2e1   :  { %v1072_v28 = vadd.f32 %v1061_v20, %v955_v0 }
 0x2e2   :  { %v946_v43 = vpop.f32.mrf.mxu3 }
 0x2e3   :  { %v956_v17 = vadd.f32 %v946_v43, %v839_v59  ;;  %v2512_v25 = vadd.f32 %v1115_v32, %v1072_v28 }
 0x2e8   :  { %v1063_v60 = vpop.f32.mrf.mxu0 }
 0x2e9   :  { %v1073_v34 = vadd.f32 %v1063_v60, %v956_v17 }
 0x2eb   :  { %v2514_v16 = vadd.f32 %v1120_v36, %v1073_v34 }
 0x2ed   :  { %v1133_v42 = vpack.c.bf16 %v2514_v16, %v2512_v25 }
 0x2ef   :  { %1854 = vmatmul.msk.bf16.gmra.mxu1 %vm1150_vm3, %v1133_v42 }
 0x33c   :  { %v1172_v37 = vpop.f32.mrf.mxu1 }
 0x33d   :  { %v1192_v58 = vmul.f32 0.0625, %v1172_v37 }
 0x344   :  { %v1174_v9 = vpop.f32.mrf.mxu1 }
 0x345   :  { %v1193_v57 = vmul.f32 0.0625, %v1174_v9 }
 0x34c   :  { %v1177_v38 = vpop.f32.mrf.mxu1 }
 0x34d   :  { %v1194_v56 = vmul.f32 0.0625, %v1177_v38 }
 0x354   :  { %v1179_v39 = vpop.f32.mrf.mxu1 }
 0x355   :  { %v1195_v55 = vmul.f32 0.0625, %v1179_v39 }
 0x35c   :  { %v1182_v41 = vpop.f32.mrf.mxu1 }
 0x35d   :  { %v1196_v33 = vmul.f32 0.0625, %v1182_v41 }
 0x364   :  { %v1184_v46 = vpop.f32.mrf.mxu1 }
 0x365   :  { %v1197_v51 = vmul.f32 0.0625, %v1184_v46 }
 0x36c   :  { %v1187_v47 = vpop.f32.mrf.mxu1 }
 0x36d   :  { %v1198_v2 = vmul.f32 0.0625, %v1187_v47 }
 0x374   :  { %v1189_v50 = vpop.f32.mrf.mxu1 }
 0x375   :  { %v1199_v3 = vmul.f32 0.0625, %v1189_v50 }
 0x377   :  { %1216 = vmatpush.msrb.mxu0 %v1199_v3  ;;  %1919 = vmatpush.msra.mxu2 %v1199_v3 }
 0x379   :  { %1217 = vmatpush.msrb.mxu0 %v1198_v2  ;;  %1920 = vmatpush.msra.mxu2 %v1198_v2 }
 0x37b   :  { %1218 = vmatpush.msrb.mxu0 %v1197_v51  ;;  %1921 = vmatpush.msra.mxu2 %v1197_v51 }
 0x37d   :  { %1219 = vmatpush.msrb.mxu0 %v1196_v33  ;;  %1922 = vmatpush.msra.mxu2 %v1196_v33 }
 0x37f   :  { %1220 = vmatpush.msrb.mxu0 %v1195_v55  ;;  %1923 = vmatpush.msra.mxu2 %v1195_v55 }
 0x381   :  { %1221 = vmatpush.msrb.mxu0 %v1194_v56  ;;  %1924 = vmatpush.msra.mxu2 %v1194_v56 }
 0x383   :  { %1222 = vmatpush.msrb.mxu0 %v1193_v57  ;;  %1925 = vmatpush.msra.mxu2 %v1193_v57 }
 0x385   :  { %1223 = vmatpush.msrb.mxu0 %v1192_v58  ;;  %1926 = vmatpush.msra.mxu2 %v1192_v58 }
 0x386   :  { %1856 = vmatmul.msk.f32.vlgmr.msra.gmra.mxu2 %vm187_vm2, %v1201_v13  ;;  %1855 = vmatmul.msk.f32.vlgmr.msrb.gmra.mxu0 %vm187_vm2, %v1200_v23 }
 0x403   :  { %v1225_v24 = vpop.f32.mrf.mxu0 }
 0x404   :  { %v1231_v4 = vmax.f32 %v1225_v24, 0.0 }
 0x409   :  { %v1228_v1 = vpop.f32.mrf.mxu2 }
 0x40a   :  { %v1232_v15 = vmax.f32 %v1228_v1, 0.0 }
 0x40c   :  { %1280 = vmatpush.msra.mxu3 %v1232_v15 }
 0x40e   :  { %1281 = vmatpush.msra.mxu3 %v1231_v4 }
 0x40f   :  { %1857 = vmatmul.msk.f32.vlgmr.msra.gmra.mxu3 %vm1241_vm4, %v1233_v5 }
 0x417   :  { %1858 = vmatmul.msk.f32.gmra.mxu3 %vm1241_vm4, %v1234_v30 }
 0x41f   :  { %1859 = vmatmul.msk.f32.gmra.mxu3 %vm1241_vm4, %v1235_v62 }
 0x427   :  { %1860 = vmatmul.msk.f32.gmra.mxu3 %vm1241_vm4, %v1236_v40 }
 0x42f   :  { %1861 = vmatmul.msk.f32.gmra.mxu3 %vm1241_vm4, %v1237_v44 }
 0x437   :  { %1862 = vmatmul.msk.f32.gmra.mxu3 %vm1241_vm4, %v1238_v8 }
 0x43f   :  { %1863 = vmatmul.msk.f32.gmra.mxu3 %vm1241_vm4, %v1239_v10 }
 0x447   :  { %1864 = vmatmul.msk.f32.gmra.mxu3 %vm1241_vm4, %v1240_v11 }
 0x492   :  { %v1283_v48 = vpop.f32.mrf.mxu3 }
 0x493   :  { %v1865_v35 = vmul.f32 -1.442695, %v1283_v48  ;;  %v1509_v48 = vld [vmem:[%s2769_s7] sm:$0x1] }
 0x495   :  { %1946 = vpow2.f32 %v1865_v35  ;;  %v1525_v35 = vsel %vm1523_vm9, %v1509_v48, 0 }
 0x496   :  { %1534 = vmatpush.bf16.msrb.mxu2 %v1525_v35 }
 0x49a   :  { %v1286_v12 = vpop.f32.mrf.mxu3 }
 0x49b   :  { %v1947_v45 = vpop.eup %1946  ;;  %v1866_v14 = vmul.f32 -1.442695, %v1286_v12 }
 0x49c   :  { %v2559_v52 = vadd.f32 1.0, %v1947_v45 }
 0x49e   :  { %v1348_v33 = vand.u32 2147483647, %v2559_v52  ;;  %vm1344_vm6 = vweird.f32 %v2559_v52  ;;  %v1350_v5 = vand.u32 2147483648, %v2559_v52 }
 0x4a0   :  { %vm2612_vm8 = vcmp.eq.f32.partialorder %v1348_v33, 8.507059e+37 }
 0x4a2   :  { %v1289_v31 = vpop.f32.mrf.mxu3 }
 0x4a3   :  { %v1867_v22 = vmul.f32 -1.442695, %v1289_v31 }
 0x4a5   :  { %1948 = vpow2.f32 %v1867_v22  ;;  %v1351_v22 = vor.u32 1.1754944e-38, %v1350_v5 }
 0x4a6   :  { %1950 = vpow2.f32 %v1866_v14 }
 0x4aa   :  { %v1292_v49 = vpop.f32.mrf.mxu3 }
 0x4ab   :  { %v1868_v27 = vmul.f32 -1.442695, %v1292_v49  ;;  %v1949_v20 = vpop.eup %1948 }
 0x4ac   :  { %v2562_v21 = vadd.f32 1.0, %v1949_v20  ;;  %v1951_v7 = vpop.eup %1950 }
 0x4ad   :  { %1952 = vpow2.f32 %v1868_v27  ;;  %v2567_v17 = vadd.f32 1.0, %v1951_v7 }
 0x4ae   :  { %v1378_v31 = vand.u32 2147483647, %v2562_v21  ;;  %v1380_v14 = vand.u32 2147483648, %v2562_v21  ;;  %vm1374_vm12 = vweird.f32 %v2562_v21 }
 0x4af   :  { %v1363_v49 = vand.u32 2147483647, %v2567_v17  ;;  %v1365_v45 = vand.u32 2147483648, %v2567_v17  ;;  %vm1359_vm15 = vweird.f32 %v2567_v17 }
 0x4b0   :  { %vm1379_vm0 = vcmp.eq.f32.partialorder %v1378_v31, 8.507059e+37 }
 0x4b2   :  { %v1295_v54 = vpop.f32.mrf.mxu3 }
 0x4b3   :  { %v1869_v53 = vmul.f32 -1.442695, %v1295_v54  ;;  %v1953_v26 = vpop.eup %1952 }
 0x4b4   :  { %v2571_v34 = vadd.f32 1.0, %v1953_v26 }
 0x4b5   :  { %1954 = vpow2.f32 %v1869_v53 }
 0x4b6   :  { %1956 = vrcp.f32 %v2559_v52 }
 0x4b7   :  { %1958 = vrcp.f32 %v2562_v21 }
 0x4ba   :  { %v1298_v43 = vpop.f32.mrf.mxu3 }
 0x4bb   :  { %v1955_v59 = vpop.eup %1954  ;;  %v1870_v0 = vmul.f32 -1.442695, %v1298_v43 }
 0x4bc   :  { %v2565_v28 = vpop.eup %1956  ;;  %v2569_v60 = vadd.f32 1.0, %v1955_v59 }
 0x4bd   :  { %1960 = vpow2.f32 %v1870_v0  ;;  %v1340_v32 = vmul.f32 %v2565_v28, %v2559_v52  ;;  %v2577_v36 = vpop.eup %1958  ;;  %vm1345_vm5 = vweird.f32 %v2565_v28 }
 0x4be   :  { %1962 = vrcp.f32 %v2569_v60  ;;  %v1370_v41 = vmul.f32 %v2577_v36, %v2562_v21  ;;  %vm2608_vm7 = vmor %vm1344_vm6, %vm1345_vm5  ;;  %vm1375_vm10 = vweird.f32 %v2577_v36  ;;  %v1410_v59 = vand.u32 2147483648, %v2569_v60 }
 0x4bf   :  { %1964 = vrcp.f32 %v2567_v17  ;;  %v1341_v9 = vsub.f32 1.0, %v1340_v32  ;;  %vm2640_vm13 = vmor %vm1374_vm12, %vm1375_vm10  ;;  %vm1404_vm1 = vweird.f32 %v2569_v60  ;;  %v1408_v32 = vand.u32 2147483647, %v2569_v60 }
 0x4c0   :  { %1966 = vrcp.f32 %v2571_v34  ;;  %v1371_v51 = vsub.f32 1.0, %v1370_v41  ;;  %vm1389_vm5 = vweird.f32 %v2571_v34  ;;  %vm2673_vm6 = vcmp.eq.f32.partialorder %v1363_v49, 8.507059e+37 }
 0x4c1   :  { %v1342_v3 = vmul.f32 %v2565_v28, %v1341_v9 }
 0x4c2   :  { %v1301_v42 = vpop.f32.mrf.mxu3  ;;  %v1372_v15 = vmul.f32 %v2577_v36, %v1371_v51  ;;  %v1411_v51 = vor.u32 1.1754944e-38, %v1410_v59 }
 0x4c3   :  { %v1961_v37 = vpop.eup %1960  ;;  %v1871_v38 = vmul.f32 -1.442695, %v1301_v42  ;;  %v1343_v23 = vadd.f32 %v2565_v28, %v1342_v3 }
 0x4c4   :  { %v2580_v39 = vpop.eup %1962  ;;  %v2584_v46 = vadd.f32 1.0, %v1961_v37  ;;  %v1373_v12 = vadd.f32 %v2577_v36, %v1372_v15 }
 0x4c5   :  { %1968 = vpow2.f32 %v1871_v38  ;;  %v2586_v47 = vpop.eup %1964  ;;  %v1400_v2 = vmul.f32 %v2580_v39, %v2569_v60  ;;  %v1347_v8 = vsel %vm2608_vm7, %v2565_v28, %v1343_v23  ;;  %vm1405_vm14 = vweird.f32 %v2580_v39 }
 0x4c6   :  { %1970 = vrcp.f32 %v2584_v46  ;;  %v2589_v50 = vpop.eup %1966  ;;  %v1355_v55 = vmul.f32 %v2586_v47, %v2567_v17  ;;  %vm1360_vm11 = vweird.f32 %v2586_v47  ;;  %v2638_v53 = vsel %vm2612_vm8, %v1351_v22, %v1347_v8  ;;  %vm2661_vm4 = vmor %vm1404_vm1, %vm1405_vm14 }
 0x4c7   :  { %v1385_v56 = vmul.f32 %v2589_v50, %v2571_v34  ;;  %v1401_v13 = vsub.f32 1.0, %v1400_v2  ;;  %v1377_v21 = vsel %vm2640_vm13, %v2577_v36, %v1373_v12  ;;  %v1381_v28 = vor.u32 1.1754944e-38, %v1380_v14 }
 0x4c8   :  { %v1356_v40 = vsub.f32 1.0, %v1355_v55  ;;  %vm1390_vm2 = vweird.f32 %v2589_v50  ;;  %v1393_v2 = vand.u32 2147483647, %v2571_v34  ;;  %vm1409_vm8 = vcmp.eq.f32.partialorder %v1408_v32, 8.507059e+37 }
 0x4c9   :  { %v1386_v44 = vsub.f32 1.0, %v1385_v56  ;;  %v1402_v10 = vmul.f32 %v2580_v39, %v1401_v13  ;;  %v1382_v38 = vsel %vm1379_vm0, %v1381_v28, %v1377_v21  ;;  %vm2677_vm7 = vmor %vm1389_vm5, %vm1390_vm2  ;;  %v1395_v13 = vand.u32 2147483648, %v2571_v34 }
 0x4ca   :  { %v1304_v57 = vpop.f32.mrf.mxu3  ;;  %v1357_v27 = vmul.f32 %v2586_v47, %v1356_v40  ;;  %vm1419_vm13 = vweird.f32 %v2584_v46  ;;  %v1423_v62 = vand.u32 2147483647, %v2584_v46  ;;  %v1425_v40 = vand.u32 2147483648, %v2584_v46  ;;  %vm2697_vm0 = vmor %vm1359_vm15, %vm1360_vm11 }
 0x4cb   :  { %v1969_v58 = vpop.eup %1968  ;;  %v1872_v24 = vmul.f32 -1.442695, %v1304_v57  ;;  %v1387_v52 = vmul.f32 %v2589_v50, %v1386_v44  ;;  %v1403_v7 = vadd.f32 %v2580_v39, %v1402_v10  ;;  %vm1394_vm11 = vcmp.eq.f32.partialorder %v1393_v2, 8.507059e+37 }
 0x4cc   :  { %v2601_v1 = vpop.eup %1970  ;;  %v2604_v4 = vadd.f32 1.0, %v1969_v58  ;;  %v1358_v37 = vadd.f32 %v2586_v47, %v1357_v27  ;;  %v1459_v58 = vmax.f32 %v2638_v53, %v1382_v38  ;;  %vm1424_vm15 = vcmp.eq.f32.partialorder %v1423_v62, 8.507059e+37 }
 0x4cd   :  { %1972 = vpow2.f32 %v1872_v24  ;;  %v1415_v11 = vmul.f32 %v2601_v1, %v2584_v46  ;;  %v1388_v9 = vadd.f32 %v2589_v50, %v1387_v52  ;;  %v1407_v60 = vsel %vm2661_vm4, %v2580_v39, %v1403_v7 }
 0x4ce   :  { %1974 = vrcp.f32 %v2604_v4  ;;  %v1440_v33 = vand.u32 2147483648, %v2604_v4  ;;  %v1438_v57 = vand.u32 2147483647, %v2604_v4  ;;  %v1412_v24 = vsel %vm1409_vm8, %v1411_v51, %v1407_v60 }
 0x4cf   :  { %v1416_v26 = vsub.f32 1.0, %v1415_v11  ;;  %v1392_v23 = vsel %vm2677_vm7, %v2589_v50, %v1388_v9  ;;  %vm1420_vm10 = vweird.f32 %v2601_v1  ;;  %vm1434_vm12 = vweird.f32 %v2604_v4 }
 0x4d0   :  { %v1441_v44 = vor.u32 1.1754944e-38, %v1440_v33  ;;  %v1461_v50 = vmax.f32 %v1459_v58, %v1412_v24  ;;  %vm1439_vm1 = vcmp.eq.f32.partialorder %v1438_v57, 8.507059e+37  ;;  %v1362_v10 = vsel %vm2697_vm0, %v2586_v47, %v1358_v37  ;;  %vm2709_vm2 = vmor %vm1419_vm13, %vm1420_vm10 }
 0x4d1   :  { %v1417_v41 = vmul.f32 %v2601_v1, %v1416_v26  ;;  %v1366_v46 = vor.u32 1.1754944e-38, %v1365_v45  ;;  %v1396_v11 = vor.u32 1.1754944e-38, %v1395_v13  ;;  %v1426_v47 = vor.u32 1.1754944e-38, %v1425_v40 }
 0x4d3   :  { %v1973_v54 = vpop.eup %1972  ;;  %v1418_v15 = vadd.f32 %v2601_v1, %v1417_v41  ;;  %v1397_v49 = vsel %vm1394_vm11, %v1396_v11, %v1392_v23  ;;  %v1367_v52 = vsel %vm2673_vm6, %v1366_v46, %v1362_v10  ;;  %vm1510_vm6 = vcmask 15360  }
 0x4d4   :  { %v1975_v43 = vpop.eup %1974  ;;  %v2651_v0 = vadd.f32 1.0, %v1973_v54  ;;  %v1460_v7 = vmax.f32 %v1367_v52, %v1397_v49 }
 0x4d5   :  { %v1430_v42 = vmul.f32 %v1975_v43, %v2604_v4  ;;  %vm1435_vm9 = vweird.f32 %v1975_v43  ;;  %v1422_v31 = vsel %vm2709_vm2, %v2601_v1, %v1418_v15 }
 0x4d6   :  { %1976 = vrcp.f32 %v2651_v0  ;;  %vm1436_vm14 = vmor %vm1434_vm12, %vm1435_vm9  ;;  %v1455_v17 = vand.u32 2147483648, %v2651_v0  ;;  %v1453_v27 = vand.u32 2147483647, %v2651_v0  ;;  %v1427_v54 = vsel %vm1424_vm15, %v1426_v47, %v1422_v31 }
 0x4d7   :  { %v1431_v3 = vsub.f32 1.0, %v1430_v42  ;;  %vm1449_vm5 = vweird.f32 %v2651_v0  ;;  %v1462_v28 = vmax.f32 %v1460_v7, %v1427_v54 }
 0x4d8   :  { %v1456_v21 = vor.u32 1.1754944e-38, %v1455_v17  ;;  %vm1454_vm8 = vcmp.eq.f32.partialorder %v1453_v27, 8.507059e+37 }
 0x4d9   :  { %v1432_v39 = vmul.f32 %v1975_v43, %v1431_v3 }
 0x4db   :  { %v1433_v5 = vadd.f32 %v1975_v43, %v1432_v39 }
 0x4dc   :  { %v1977_v30 = vpop.eup %1976 }
 0x4dd   :  { %v1437_v8 = vsel %vm1436_vm14, %v1975_v43, %v1433_v5  ;;  %v1445_v4 = vmul.f32 %v1977_v30, %v2651_v0  ;;  %vm1450_vm4 = vweird.f32 %v1977_v30 }
 0x4de   :  { %v1442_v12 = vsel %vm1439_vm1, %v1441_v44, %v1437_v8  ;;  %vm1451_vm7 = vmor %vm1449_vm5, %vm1450_vm4 }
 0x4df   :  { %v1463_v35 = vmax.f32 %v1461_v50, %v1442_v12  ;;  %v1446_v22 = vsub.f32 1.0, %v1445_v4 }
 0x4e1   :  { %v1471_v45 = vsub.f32 %v1382_v38, %v1463_v35  ;;  %v1447_v14 = vmul.f32 %v1977_v30, %v1446_v22  ;;  %v1465_v20 = vsub.f32 %v2638_v53, %v1463_v35  ;;  %v1477_v43 = vsub.f32 %v1412_v24, %v1463_v35 }
 0x4e2   :  { %v1483_v37 = vsub.f32 %v1442_v12, %v1463_v35 }
 0x4e3   :  { %v1473_v1 = vmul.f32 1.442695, %v1471_v45  ;;  %v1448_v26 = vadd.f32 %v1977_v30, %v1447_v14  ;;  %v1467_v59 = vmul.f32 1.442695, %v1465_v20  ;;  %v1479_v36 = vmul.f32 1.442695, %v1477_v43 }
 0x4e4   :  { %v1485_v41 = vmul.f32 1.442695, %v1483_v37 }
 0x4e5   :  { %v1452_v32 = vsel %vm1451_vm7, %v1977_v30, %v1448_v26  ;;  %1978 = vpow2.f32 %v1473_v1 }
 0x4e6   :  { %v1457_v42 = vsel %vm1454_vm8, %v1456_v21, %v1452_v32  ;;  %1980 = vpow2.f32 %v1467_v59 }
 0x4e7   :  { %v1464_v9 = vmax.f32 %v1462_v28, %v1457_v42  ;;  %1982 = vpow2.f32 %v1479_v36 }
 0x4e9   :  { %v1472_v38 = vsub.f32 %v1397_v49, %v1464_v9  ;;  %v1466_v53 = vsub.f32 %v1367_v52, %v1464_v9  ;;  %v1478_v60 = vsub.f32 %v1427_v54, %v1464_v9  ;;  %v1484_v0 = vsub.f32 %v1457_v42, %v1464_v9 }
 0x4eb   :  { %v1475_v3 = vmul.f32 1.442695, %v1472_v38  ;;  %v1979_v2 = vpop.eup %1978  ;;  %v1469_v51 = vmul.f32 1.442695, %v1466_v53  ;;  %v1481_v55 = vmul.f32 1.442695, %v1478_v60 }
 0x4ec   :  { %v1981_v33 = vpop.eup %1980  ;;  %v1487_v39 = vmul.f32 1.442695, %v1484_v0 }
 0x4ed   :  { %1984 = vpow2.f32 %v1475_v3  ;;  %v1489_v56 = vadd.f32 %v1981_v33, %v1979_v2  ;;  %v1983_v57 = vpop.eup %1982 }
 0x4ee   :  { %1986 = vpow2.f32 %v1485_v41 }
 0x4ef   :  { %1988 = vpow2.f32 %v1469_v51  ;;  %v1491_v58 = vadd.f32 %v1983_v57, %v1489_v56 }
 0x4f0   :  { %1990 = vpow2.f32 %v1481_v55 }
 0x4f1   :  { %1992 = vpow2.f32 %v1487_v39 }
 0x4f3   :  { %v1985_v23 = vpop.eup %1984 }
 0x4f4   :  { %v1987_v13 = vpop.eup %1986 }
 0x4f5   :  { %v1989_v24 = vpop.eup %1988  ;;  %v1493_v5 = vadd.f32 %v1987_v13, %v1491_v58 }
 0x4f6   :  { %v1490_v15 = vadd.f32 %v1989_v24, %v1985_v23  ;;  %v1991_v30 = vpop.eup %1990 }
 0x4f7   :  { %v1993_v40 = vpop.eup %1992  ;;  %1994 = vrcp.f32 %v1493_v5 }
 0x4f8   :  { %v1492_v62 = vadd.f32 %v1991_v30, %v1490_v15 }
 0x4fa   :  { %v1494_v44 = vadd.f32 %v1993_v40, %v1492_v62 }
 0x4fc   :  { %1996 = vrcp.f32 %v1494_v44 }
 0x4fd   :  { %v1995_v34 = vpop.eup %1994 }
 0x4fe   :  { %v1497_v8 = vmul.f32 %v1995_v34, %v1981_v33  ;;  %v1499_v11 = vmul.f32 %v1995_v34, %v1979_v2  ;;  %v1501_v31 = vmul.f32 %v1995_v34, %v1983_v57  ;;  %v1503_v49 = vmul.f32 %v1995_v34, %v1987_v13 }
 0x502   :  { %v1997_v50 = vpop.eup %1996 }
 0x503   :  { %v1498_v4 = vmul.f32 %v1997_v50, %v1989_v24  ;;  %v1500_v46 = vmul.f32 %v1997_v50, %v1985_v23  ;;  %v1502_v12 = vmul.f32 %v1997_v50, %v1991_v30  ;;  %v1504_v22 = vmul.f32 %v1997_v50, %v1993_v40 }
 0x505   :  { %v1505_v10 = vpack.c.bf16 %v1498_v4, %v1497_v8  ;;  %v1506_v48 = vpack.c.bf16 %v1500_v46, %v1499_v11  ;;  %v1507_v35 = vpack.c.bf16 %v1502_v12, %v1501_v31  ;;  %v1508_v47 = vpack.c.bf16 %v1504_v22, %v1503_v49 }
 0x507   :  { %1873 = vmatmul.msk.bf16.vlgmr.msrb.gmra.mxu2 %vm1510_vm6, %v1505_v10 }
 0x517   :  { %1874 = vmatmul.msk.bf16.gmra.mxu2 %vm1510_vm6, %v1506_v48 }
 0x527   :  { %1875 = vmatmul.msk.bf16.gmra.mxu2 %vm1510_vm6, %v1507_v35 }
 0x537   :  { %1876 = vmatmul.msk.bf16.gmra.mxu2 %vm1510_vm6, %v1508_v47 }
 0x58a   :  { %v1536_v17 = vpop.f32.mrf.mxu2 }
 0x58b   :  { %v1556_v45 = vmul.f32 %v1536_v17, %v2477_v29 }
 0x58d   :  { %1564 = vst.msk [vmem:[%s2770_s8] sm:$0xff] %vm1150_vm3, %v1556_v45 }
 0x592   :  { %v1538_v14 = vpop.f32.mrf.mxu2 }
 0x593   :  { %v1557_v27 = vmul.f32 %v1538_v14, %v2479_v6 }
 0x595   :  { %1565 = vst.msk [vmem:[%s2770_s8 + $0x8] sm:$0xff] %vm1150_vm3, %v1557_v27 }
 0x59a   :  { %v1541_v52 = vpop.f32.mrf.mxu2 }
 0x59b   :  { %v1558_v54 = vmul.f32 %v1541_v52, %v2490_v61 }
 0x59d   :  { %1566 = vst.msk [vmem:[%s2770_s8 + $0x10] sm:$0xff] %vm1150_vm3, %v1558_v54 }
 0x5a2   :  { %v1543_v29 = vpop.f32.mrf.mxu2 }
 0x5a3   :  { %v1559_v20 = vmul.f32 %v1543_v29, %v2492_v63 }
 0x5a5   :  { %1567 = vst.msk [vmem:[%s2770_s8 + $0x18] sm:$0xff] %vm1150_vm3, %v1559_v20 }
 0x5aa   :  { %v1546_v6 = vpop.f32.mrf.mxu2 }
 0x5ab   :  { %v1560_v7 = vmul.f32 %v1546_v6, %v2503_v18 }
 0x5ad   :  { %1568 = vst.msk [vmem:[%s2770_s8 + $0x20] sm:$0xff] %vm1150_vm3, %v1560_v7 }
 0x5b2   :  { %v1548_v61 = vpop.f32.mrf.mxu2 }
 0x5b3   :  { %v1561_v1 = vmul.f32 %v1548_v61, %v2505_v19 }
 0x5b5   :  { %1569 = vst.msk [vmem:[%s2770_s8 + $0x28] sm:$0xff] %vm1150_vm3, %v1561_v1 }
 0x5ba   :  { %v1551_v63 = vpop.f32.mrf.mxu2 }
 0x5bb   :  { %v1562_v26 = vmul.f32 %v1551_v63, %v2512_v25 }
 0x5bd   :  { %1570 = vst.msk [vmem:[%s2770_s8 + $0x30] sm:$0xff] %vm1150_vm3, %v1562_v26 }
 0x5c2   :  { %v1553_v18 = vpop.f32.mrf.mxu2 }
 0x5c3   :  { %v1563_v43 = vmul.f32 %v1553_v18, %v2514_v16 }
 0x5c5   :  { %1571 = vst.msk [vmem:[%s2770_s8 + $0x38] sm:$0xff] %vm1150_vm3, %v1563_v43 }

</bundles_post_ra>
